<compile_context>
chip_gen: v6e
topology: v6e:2x2x1
jax: 0.10.0
libtpu: 0.0.40
codegen_flags: <defaults>
</compile_context>

<pallas_src>
from functools import partial

import jax
import jax.numpy as jnp
import numpy as np
from jax.experimental import pallas as pl
from jax.experimental.pallas import tpu as pltpu


# ---------------------------------------------------------------------------
# Host-side (trace-time) layout prep helpers — zero runtime cost under jit.
# ---------------------------------------------------------------------------
def _tap_masks(n, h, w, k):
    """(K*K, N*H*W) f32 masks: 1 where the tap's source pixel is inside its own image."""
    pad = (k - 1) // 2
    j = np.arange(n * h * w)
    y = (j % (h * w)) // w
    x = j % w
    rows = []
    for ky in range(k):
        for kx in range(k):
            dy, dx = ky - pad, kx - pad
            ok = (y + dy >= 0) & (y + dy < h) & (x + dx >= 0) & (x + dx < w)
            rows.append(ok.astype(np.float32))
    return np.stack(rows)                                    # (K*K, L) numpy


def _prep_conv_weight(w_oihw, cpad):
    """OIHW -> (Cout, K*K*cpad) matching im2col row order (ky, kx, c)."""
    cout, cin, k, _ = w_oihw.shape
    wt = jnp.transpose(w_oihw, (0, 2, 3, 1))                     # (Cout, K, K, Cin)
    wt = jnp.pad(wt, ((0, 0), (0, 0), (0, 0), (0, cpad - cin)))  # pad Cin -> cpad
    return wt.reshape(cout, k * k * cpad)


def _prep_conv0_weight(w_oihw, kkpad):
    """Layer-0 (Cin=1) OIHW -> (Cout, kkpad) with tap order t = ky*K + kx."""
    cout, cin, k, _ = w_oihw.shape
    assert cin == 1
    w0 = w_oihw.reshape(cout, k * k)
    return jnp.pad(w0, ((0, 0), (0, kkpad - k * k)))


# ---------------------------------------------------------------------------
# Fully fused forward kernel: convs + (dense∘heads folded) in one pallas_call.
# ---------------------------------------------------------------------------
def _fused_actor_critic_kernel(
        x_ref, maskb_ref, w0_ref, wconv_ref, bconv_ref, whead_ref, bhead_ref,
        sel_ref, out_ref,
        patch0_ref, patch_ref, head_ref,
        *, K, C, depth, n_heads, shifts):
    KK = K * K
    KKPAD = patch0_ref.shape[0]

    # ---- Layer 0, specialized to Cin = 1: (KKPAD, L) patch from channel 0. ----
    patch0_ref[...] = jnp.zeros_like(patch0_ref)        # zero padded tail rows
    x0 = x_ref[...]                                     # (1, L) lane-dense input
    for t in range(KK):
        shifted = pltpu.roll(x0, shift=shifts[t], axis=1)          # XLU rotate
        patch0_ref[t:t + 1, :] = shifted * maskb_ref[t * C:t * C + 1, :]
    acc = jnp.dot(w0_ref[...], patch0_ref[...],
                  preferred_element_type=jnp.float32)              # (C, L)
    act = jnp.maximum(acc + bconv_ref[0], 0.0)                     # bias + ReLU

    # ---- Layers 1..depth-1: (K*K*C, L) im2col patch via roll + aligned mask. --
    for layer in range(1, depth):
        for t in range(KK):
            shifted = pltpu.roll(act, shift=shifts[t], axis=1)     # (C, L)
            patch_ref[t * C:(t + 1) * C, :] = (
                shifted * maskb_ref[t * C:(t + 1) * C, :])         # aligned store
        acc = jnp.dot(wconv_ref[layer - 1], patch_ref[...],
                      preferred_element_type=jnp.float32)          # (C, L)
        act = jnp.maximum(acc + bconv_ref[layer], 0.0)

    # ---- Fused dense + actor/critic heads on the lane-dense activation. ------
    # out[o, n] = bhead[o] + sum_c sum_{l in image n} act[c, l] * whead[o, c, l]
    for o in range(n_heads):
        head_ref[o:o + 1, :] = jnp.sum(act * whead_ref[o], axis=0, keepdims=True)
    out = jnp.dot(head_ref[...], sel_ref[...],
                  preferred_element_type=jnp.float32)              # (n_heads, N)
    out_ref[...] = out + bhead_ref[...]


def actor_critic_forward(x_nchw, params, *, kernel=5):
    N, cin0, H, W = x_nchw.shape
    convs = params["convs"]
    C = convs[0][0].shape[0]
    depth = len(convs)
    hidden = params["wd"].shape[0]
    n_actions = params["wa"].shape[0]
    n_heads = n_actions + 1
    HW = H * W
    L = N * HW
    KK = kernel * kernel
    KKPAD = -(-KK // 8) * 8                 # pad tap count to a sublane multiple
    P = (kernel - 1) // 2

    # Hard assumptions of this fused kernel (single 128-lane activation tile).
    assert cin0 == 1, "first conv layer expects a single input channel"
    assert L == 128, "kernel assumes N*H*W == 128 (one lane tile of boards)"
    assert C % 8 == 0 and hidden % 8 == 0
    assert P * W + P < L, "tap shift must stay within one lane tile"
    assert depth >= 1

    # --- input layout: (N,1,H,W) -> (1, N*H*W) lane-dense row ------------------
    x_in = jnp.transpose(x_nchw, (1, 0, 2, 3)).reshape(cin0, L)

    # --- im2col tap masks, pre-broadcast to (K*K*C, L) -------------------------
    masks = _tap_masks(N, H, W, kernel)                       # (KK, L) numpy
    mask_big = jnp.asarray(np.repeat(masks, C, axis=0))       # (KK*C, L)

    # Static lane-roll amount per tap: y[j] = x[j + s]  <=>  roll by (-s) mod L.
    shifts = tuple(int((-((ky - P) * W + (kx - P))) % L)
                   for ky in range(kernel) for kx in range(kernel))

    # --- conv weights -----------------------------------------------------------
    w0 = _prep_conv0_weight(convs[0][0], KKPAD)               # (C, KKPAD)
    if depth > 1:
        wconv = jnp.stack([_prep_conv_weight(w, C) for (w, _) in convs[1:]])
    else:
        wconv = jnp.zeros((1, C, KK * C), jnp.float32)        # unused dummy
    n_wconv = wconv.shape[0]
    bconv = jnp.stack([b.reshape(C, 1) for (_, b) in convs])  # (depth, C, 1)

    # --- dense + heads folded into one (F, n_heads) weight, lane-expanded -------
    wh_all = jnp.concatenate([params["wa"], params["wc"]], axis=0).T   # (hidden, 5)
    bh_all = jnp.concatenate([params["ba"], params["bc"]]).reshape(1, n_heads)
    wcomb = params["wd"].T @ wh_all                                    # (F, 5), exact fold
    bcomb = params["bd"].reshape(1, hidden) @ wh_all + bh_all          # (1, 5)
    wc3 = wcomb.reshape(C, HW, n_heads)                                # [c, p, o]
    whead = jnp.tile(jnp.transpose(wc3, (2, 0, 1)), (1, 1, N))         # (5, C, L)
    bhead = bcomb.T                                                    # (5, 1)

    # Per-image lane selector used for the final reduction matmul.
    sel = jnp.asarray((np.arange(L)[:, None] // HW
                       == np.arange(N)[None, :]).astype(np.float32))  # (L, N)

    kern = partial(_fused_actor_critic_kernel, K=kernel, C=C, depth=depth,
                   n_heads=n_heads, shifts=shifts)
    out = pl.pallas_call(
        kern,
        out_shape=jax.ShapeDtypeStruct((n_heads, N), jnp.float32),
        grid=(1,),
        in_specs=[
            pl.BlockSpec((cin0, L), lambda i: (0, 0)),
            pl.BlockSpec((KK * C, L), lambda i: (0, 0)),
            pl.BlockSpec((C, KKPAD), lambda i: (0, 0)),
            pl.BlockSpec((n_wconv, C, KK * C), lambda i: (0, 0, 0)),
            pl.BlockSpec((depth, C, 1), lambda i: (0, 0, 0)),
            pl.BlockSpec((n_heads, C, L), lambda i: (0, 0, 0)),
            pl.BlockSpec((n_heads, 1), lambda i: (0, 0)),
            pl.BlockSpec((L, N), lambda i: (0, 0)),
        ],
        out_specs=pl.BlockSpec((n_heads, N), lambda i: (0, 0)),
        scratch_shapes=[
            pltpu.VMEM((KKPAD, L), jnp.float32),     # layer-0 im2col patch
            pltpu.VMEM((KK * C, L), jnp.float32),    # layers>=1 im2col patch
            pltpu.VMEM((n_heads, L), jnp.float32),   # per-head partial sums
        ],
        compiler_params=pltpu.CompilerParams(
            dimension_semantics=("arbitrary",)),     # single step on one TC
    )(x_in, mask_big, w0, wconv, bconv, whead, bhead, sel)

    out_t = out.T                                    # (N, n_heads) — free in XLA
    return out_t[:, :n_actions], out_t[:, n_actions:]


# ---------------------------------------------------------------------------
# Parameter init (PyTorch layouts) and pure-JAX reference of the PyTorch forward.
# ---------------------------------------------------------------------------
def init_params(key, *, height, width, kernel=5, channels=8, depth=3, hidden=32):
    keys = jax.random.split(key, 2 * depth + 6)
    convs = []
    cin = 1
    for d in range(depth):
        w = 0.1 * jax.random.normal(keys[2 * d], (channels, cin, kernel, kernel),
                                    jnp.float32)             # OIHW (PyTorch)
        b = 0.1 * jax.random.normal(keys[2 * d + 1], (channels,), jnp.float32)
        convs.append((w, b))
        cin = channels
    F = height * width * channels
    k0 = 2 * depth
    wd = 0.05 * jax.random.normal(keys[k0 + 0], (hidden, F), jnp.float32)
    bd = 0.05 * jax.random.normal(keys[k0 + 1], (hidden,), jnp.float32)
    wc = 0.05 * jax.random.normal(keys[k0 + 2], (1, hidden), jnp.float32)
    bc = 0.05 * jax.random.normal(keys[k0 + 3], (1,), jnp.float32)
    wa = 0.05 * jax.random.normal(keys[k0 + 4], (4, hidden), jnp.float32)
    ba = 0.05 * jax.random.normal(keys[k0 + 5], (4,), jnp.float32)
    return {"convs": convs, "wd": wd, "bd": bd, "wc": wc, "bc": bc,
            "wa": wa, "ba": ba}


def reference_forward(x_nchw, params, *, kernel=5):
    """Pure-JAX (XLA) reference reproducing the PyTorch forward."""
    P = (kernel - 1) // 2
    y = x_nchw
    for (w, b) in params["convs"]:
        y = jax.lax.conv_general_dilated(
            y, w, window_strides=(1, 1), padding=((P, P), (P, P)),
            dimension_numbers=("NCHW", "OIHW", "NCHW"))
        y = jnp.maximum(y + b[None, :, None, None], 0.0)
    flat = y.reshape(y.shape[0], -1)
    h = flat @ params["wd"].T + params["bd"]
    logits = h @ params["wa"].T + params["ba"]
    value = h @ params["wc"].T + params["bc"]
    return logits, value


if __name__ == "__main__":
    # Small shapes consistent with the module: batch=2, 1 input channel,
    # 8x8 board, 8 conv channels, depth=3, hidden=32.  N*H*W = 128 exactly.
    batch, height, width = 2, 8, 8
    kernel, channels, depth, hidden = 5, 8, 3, 32

    key = jax.random.PRNGKey(0)
    pkey, xkey = jax.random.split(key)
    params = init_params(pkey, height=height, width=width, kernel=kernel,
                         channels=channels, depth=depth, hidden=hidden)
    x = jax.random.normal(xkey, (batch, 1, height, width), jnp.float32)

    fwd = jax.jit(partial(actor_critic_forward, kernel=kernel))
    logits, value = fwd(x, params)
    logits = jax.block_until_ready(logits)
    value = jax.block_until_ready(value)

    ref_logits, ref_value = reference_forward(x, params, kernel=kernel)

    assert logits.shape == (batch, 4) and value.shape == (batch, 1)
    # Tolerance accommodates differing MXU pass decompositions between the
    # Pallas kernel and XLA's conv/dot, while still catching layout/order bugs.
    np.testing.assert_allclose(np.asarray(logits), np.asarray(ref_logits),
                               rtol=1e-2, atol=1e-2)
    np.testing.assert_allclose(np.asarray(value), np.asarray(ref_value),
                               rtol=1e-2, atol=1e-2)
    print("KERNEL_OK")
</pallas_src>

<mosaic_0001>
module attributes {stable_mosaic.version = 11 : i64} {
  func.func @_fused_actor_critic_kernel(%arg0: i32, %arg1: memref<1x128xf32, #tpu.memory_space<vmem>>, %arg2: memref<200x128xf32, #tpu.memory_space<vmem>>, %arg3: memref<8x32xf32, #tpu.memory_space<vmem>>, %arg4: memref<2x8x200xf32, #tpu.memory_space<vmem>>, %arg5: memref<3x8x1xf32, #tpu.memory_space<vmem>>, %arg6: memref<5x8x128xf32, #tpu.memory_space<vmem>>, %arg7: memref<5x1xf32, #tpu.memory_space<vmem>>, %arg8: memref<128x2xf32, #tpu.memory_space<vmem>>, %arg9: memref<5x2xf32, #tpu.memory_space<vmem>>, %arg10: memref<32x128xf32, #tpu.memory_space<vmem>>, %arg11: memref<200x128xf32, #tpu.memory_space<vmem>>, %arg12: memref<5x128xf32, #tpu.memory_space<vmem>>) attributes {dimension_semantics = [#tpu.dimension_semantics<arbitrary>], iteration_bounds = array<i64: 1>, scalar_prefetch = 0 : i64, scratch_operands = 3 : i64, tpu.core_type = #tpu.core_type<tc>, window_params = [{pipeline_mode = #tpu.pipeline_mode<synchronous>, transform_indices = @transform_0, window_bounds = array<i64: 1, 128>}, {pipeline_mode = #tpu.pipeline_mode<synchronous>, transform_indices = @transform_1, window_bounds = array<i64: 200, 128>}, {pipeline_mode = #tpu.pipeline_mode<synchronous>, transform_indices = @transform_2, window_bounds = array<i64: 8, 32>}, {pipeline_mode = #tpu.pipeline_mode<synchronous>, transform_indices = @transform_3, window_bounds = array<i64: 2, 8, 200>}, {pipeline_mode = #tpu.pipeline_mode<synchronous>, transform_indices = @transform_4, window_bounds = array<i64: 3, 8, 1>}, {pipeline_mode = #tpu.pipeline_mode<synchronous>, transform_indices = @transform_5, window_bounds = array<i64: 5, 8, 128>}, {pipeline_mode = #tpu.pipeline_mode<synchronous>, transform_indices = @transform_6, window_bounds = array<i64: 5, 1>}, {pipeline_mode = #tpu.pipeline_mode<synchronous>, transform_indices = @transform_7, window_bounds = array<i64: 128, 2>}, {pipeline_mode = #tpu.pipeline_mode<synchronous>, transform_indices = @transform_8, window_bounds = array<i64: 5, 2>}]} {
    %cst = arith.constant 0.000000e+00 : f32
    %0 = vector.broadcast %cst : f32 to vector<32x128xf32>
    %c0 = arith.constant 0 : index
    %c0_0 = arith.constant 0 : index
    %1 = vector.load %arg10[%c0, %c0_0] : memref<32x128xf32, #tpu.memory_space<vmem>>, vector<32x128xf32>
    tpu.vector_store %arg10[%c0, %c0_0], %0 {strides = array<i32>} : memref<32x128xf32, #tpu.memory_space<vmem>>, vector<32x128xf32>,
    %c0_1 = arith.constant 0 : index
    %c0_2 = arith.constant 0 : index
    %2 = vector.load %arg1[%c0_1, %c0_2] : memref<1x128xf32, #tpu.memory_space<vmem>>, vector<1x128xf32>
    %c18_i32 = arith.constant 18 : i32
    %3 = tpu.dynamic_rotate %2 by %c18_i32 dim 1 : vector<1x128xf32>, i32 -> vector<1x128xf32>
    %c0_3 = arith.constant 0 : index
    %c0_4 = arith.constant 0 : index
    %4 = vector.load %arg2[%c0_3, %c0_4] : memref<200x128xf32, #tpu.memory_space<vmem>>, vector<1x128xf32>
    %5 = arith.mulf %3, %4 : vector<1x128xf32>
    %c0_5 = arith.constant 0 : index
    %c0_6 = arith.constant 0 : index
    %6 = vector.load %arg10[%c0_5, %c0_6] : memref<32x128xf32, #tpu.memory_space<vmem>>, vector<1x128xf32>
    tpu.vector_store %arg10[%c0_5, %c0_6], %5 {strides = array<i32>} : memref<32x128xf32, #tpu.memory_space<vmem>>, vector<1x128xf32>,
    %c17_i32 = arith.constant 17 : i32
    %7 = tpu.dynamic_rotate %2 by %c17_i32 dim 1 : vector<1x128xf32>, i32 -> vector<1x128xf32>
    %c8 = arith.constant 8 : index
    %c0_7 = arith.constant 0 : index
    %8 = vector.load %arg2[%c8, %c0_7] : memref<200x128xf32, #tpu.memory_space<vmem>>, vector<1x128xf32>
    %9 = arith.mulf %7, %8 : vector<1x128xf32>
    %c1 = arith.constant 1 : index
    %c0_8 = arith.constant 0 : index
    %10 = vector.load %arg10[%c1, %c0_8] : memref<32x128xf32, #tpu.memory_space<vmem>>, vector<1x128xf32>
    tpu.vector_store %arg10[%c1, %c0_8], %9 {strides = array<i32>} : memref<32x128xf32, #tpu.memory_space<vmem>>, vector<1x128xf32>,
    %c16_i32 = arith.constant 16 : i32
    %11 = tpu.dynamic_rotate %2 by %c16_i32 dim 1 : vector<1x128xf32>, i32 -> vector<1x128xf32>
    %c16 = arith.constant 16 : index
    %c0_9 = arith.constant 0 : index
    %12 = vector.load %arg2[%c16, %c0_9] : memref<200x128xf32, #tpu.memory_space<vmem>>, vector<1x128xf32>
    %13 = arith.mulf %11, %12 : vector<1x128xf32>
    %c2 = arith.constant 2 : index
    %c0_10 = arith.constant 0 : index
    %14 = vector.load %arg10[%c2, %c0_10] : memref<32x128xf32, #tpu.memory_space<vmem>>, vector<1x128xf32>
    tpu.vector_store %arg10[%c2, %c0_10], %13 {strides = array<i32>} : memref<32x128xf32, #tpu.memory_space<vmem>>, vector<1x128xf32>,
    %c15_i32 = arith.constant 15 : i32
    %15 = tpu.dynamic_rotate %2 by %c15_i32 dim 1 : vector<1x128xf32>, i32 -> vector<1x128xf32>
    %c24 = arith.constant 24 : index
    %c0_11 = arith.constant 0 : index
    %16 = vector.load %arg2[%c24, %c0_11] : memref<200x128xf32, #tpu.memory_space<vmem>>, vector<1x128xf32>
    %17 = arith.mulf %15, %16 : vector<1x128xf32>
    %c3 = arith.constant 3 : index
    %c0_12 = arith.constant 0 : index
    %18 = vector.load %arg10[%c3, %c0_12] : memref<32x128xf32, #tpu.memory_space<vmem>>, vector<1x128xf32>
    tpu.vector_store %arg10[%c3, %c0_12], %17 {strides = array<i32>} : memref<32x128xf32, #tpu.memory_space<vmem>>, vector<1x128xf32>,
    %c14_i32 = arith.constant 14 : i32
    %19 = tpu.dynamic_rotate %2 by %c14_i32 dim 1 : vector<1x128xf32>, i32 -> vector<1x128xf32>
    %c32 = arith.constant 32 : index
    %c0_13 = arith.constant 0 : index
    %20 = vector.load %arg2[%c32, %c0_13] : memref<200x128xf32, #tpu.memory_space<vmem>>, vector<1x128xf32>
    %21 = arith.mulf %19, %20 : vector<1x128xf32>
    %c4 = arith.constant 4 : index
    %c0_14 = arith.constant 0 : index
    %22 = vector.load %arg10[%c4, %c0_14] : memref<32x128xf32, #tpu.memory_space<vmem>>, vector<1x128xf32>
    tpu.vector_store %arg10[%c4, %c0_14], %21 {strides = array<i32>} : memref<32x128xf32, #tpu.memory_space<vmem>>, vector<1x128xf32>,
    %c10_i32 = arith.constant 10 : i32
    %23 = tpu.dynamic_rotate %2 by %c10_i32 dim 1 : vector<1x128xf32>, i32 -> vector<1x128xf32>
    %c40 = arith.constant 40 : index
    %c0_15 = arith.constant 0 : index
    %24 = vector.load %arg2[%c40, %c0_15] : memref<200x128xf32, #tpu.memory_space<vmem>>, vector<1x128xf32>
    %25 = arith.mulf %23, %24 : vector<1x128xf32>
    %c5 = arith.constant 5 : index
    %c0_16 = arith.constant 0 : index
    %26 = vector.load %arg10[%c5, %c0_16] : memref<32x128xf32, #tpu.memory_space<vmem>>, vector<1x128xf32>
    tpu.vector_store %arg10[%c5, %c0_16], %25 {strides = array<i32>} : memref<32x128xf32, #tpu.memory_space<vmem>>, vector<1x128xf32>,
    %c9_i32 = arith.constant 9 : i32
    %27 = tpu.dynamic_rotate %2 by %c9_i32 dim 1 : vector<1x128xf32>, i32 -> vector<1x128xf32>
    %c48 = arith.constant 48 : index
    %c0_17 = arith.constant 0 : index
    %28 = vector.load %arg2[%c48, %c0_17] : memref<200x128xf32, #tpu.memory_space<vmem>>, vector<1x128xf32>
    %29 = arith.mulf %27, %28 : vector<1x128xf32>
    %c6 = arith.constant 6 : index
    %c0_18 = arith.constant 0 : index
    %30 = vector.load %arg10[%c6, %c0_18] : memref<32x128xf32, #tpu.memory_space<vmem>>, vector<1x128xf32>
    tpu.vector_store %arg10[%c6, %c0_18], %29 {strides = array<i32>} : memref<32x128xf32, #tpu.memory_space<vmem>>, vector<1x128xf32>,
    %c8_i32 = arith.constant 8 : i32
    %31 = tpu.dynamic_rotate %2 by %c8_i32 dim 1 : vector<1x128xf32>, i32 -> vector<1x128xf32>
    %c56 = arith.constant 56 : index
    %c0_19 = arith.constant 0 : index
    %32 = vector.load %arg2[%c56, %c0_19] : memref<200x128xf32, #tpu.memory_space<vmem>>, vector<1x128xf32>
    %33 = arith.mulf %31, %32 : vector<1x128xf32>
    %c7 = arith.constant 7 : index
    %c0_20 = arith.constant 0 : index
    %34 = vector.load %arg10[%c7, %c0_20] : memref<32x128xf32, #tpu.memory_space<vmem>>, vector<1x128xf32>
    tpu.vector_store %arg10[%c7, %c0_20], %33 {strides = array<i32>} : memref<32x128xf32, #tpu.memory_space<vmem>>, vector<1x128xf32>,
    %c7_i32 = arith.constant 7 : i32
    %35 = tpu.dynamic_rotate %2 by %c7_i32 dim 1 : vector<1x128xf32>, i32 -> vector<1x128xf32>
    %c64 = arith.constant 64 : index
    %c0_21 = arith.constant 0 : index
    %36 = vector.load %arg2[%c64, %c0_21] : memref<200x128xf32, #tpu.memory_space<vmem>>, vector<1x128xf32>
    %37 = arith.mulf %35, %36 : vector<1x128xf32>
    %c8_22 = arith.constant 8 : index
    %c0_23 = arith.constant 0 : index
    %38 = vector.load %arg10[%c8_22, %c0_23] : memref<32x128xf32, #tpu.memory_space<vmem>>, vector<1x128xf32>
    tpu.vector_store %arg10[%c8_22, %c0_23], %37 {strides = array<i32>} : memref<32x128xf32, #tpu.memory_space<vmem>>, vector<1x128xf32>,
    %c6_i32 = arith.constant 6 : i32
    %39 = tpu.dynamic_rotate %2 by %c6_i32 dim 1 : vector<1x128xf32>, i32 -> vector<1x128xf32>
    %c72 = arith.constant 72 : index
    %c0_24 = arith.constant 0 : index
    %40 = vector.load %arg2[%c72, %c0_24] : memref<200x128xf32, #tpu.memory_space<vmem>>, vector<1x128xf32>
    %41 = arith.mulf %39, %40 : vector<1x128xf32>
    %c9 = arith.constant 9 : index
    %c0_25 = arith.constant 0 : index
    %42 = vector.load %arg10[%c9, %c0_25] : memref<32x128xf32, #tpu.memory_space<vmem>>, vector<1x128xf32>
    tpu.vector_store %arg10[%c9, %c0_25], %41 {strides = array<i32>} : memref<32x128xf32, #tpu.memory_space<vmem>>, vector<1x128xf32>,
    %c2_i32 = arith.constant 2 : i32
    %43 = tpu.dynamic_rotate %2 by %c2_i32 dim 1 : vector<1x128xf32>, i32 -> vector<1x128xf32>
    %c80 = arith.constant 80 : index
    %c0_26 = arith.constant 0 : index
    %44 = vector.load %arg2[%c80, %c0_26] : memref<200x128xf32, #tpu.memory_space<vmem>>, vector<1x128xf32>
    %45 = arith.mulf %43, %44 : vector<1x128xf32>
    %c10 = arith.constant 10 : index
    %c0_27 = arith.constant 0 : index
    %46 = vector.load %arg10[%c10, %c0_27] : memref<32x128xf32, #tpu.memory_space<vmem>>, vector<1x128xf32>
    tpu.vector_store %arg10[%c10, %c0_27], %45 {strides = array<i32>} : memref<32x128xf32, #tpu.memory_space<vmem>>, vector<1x128xf32>,
    %c1_i32 = arith.constant 1 : i32
    %47 = tpu.dynamic_rotate %2 by %c1_i32 dim 1 : vector<1x128xf32>, i32 -> vector<1x128xf32>
    %c88 = arith.constant 88 : index
    %c0_28 = arith.constant 0 : index
    %48 = vector.load %arg2[%c88, %c0_28] : memref<200x128xf32, #tpu.memory_space<vmem>>, vector<1x128xf32>
    %49 = arith.mulf %47, %48 : vector<1x128xf32>
    %c11 = arith.constant 11 : index
    %c0_29 = arith.constant 0 : index
    %50 = vector.load %arg10[%c11, %c0_29] : memref<32x128xf32, #tpu.memory_space<vmem>>, vector<1x128xf32>
    tpu.vector_store %arg10[%c11, %c0_29], %49 {strides = array<i32>} : memref<32x128xf32, #tpu.memory_space<vmem>>, vector<1x128xf32>,
    %c0_i32 = arith.constant 0 : i32
    %51 = tpu.dynamic_rotate %2 by %c0_i32 dim 1 : vector<1x128xf32>, i32 -> vector<1x128xf32>
    %c96 = arith.constant 96 : index
    %c0_30 = arith.constant 0 : index
    %52 = vector.load %arg2[%c96, %c0_30] : memref<200x128xf32, #tpu.memory_space<vmem>>, vector<1x128xf32>
    %53 = arith.mulf %51, %52 : vector<1x128xf32>
    %c12 = arith.constant 12 : index
    %c0_31 = arith.constant 0 : index
    %54 = vector.load %arg10[%c12, %c0_31] : memref<32x128xf32, #tpu.memory_space<vmem>>, vector<1x128xf32>
    tpu.vector_store %arg10[%c12, %c0_31], %53 {strides = array<i32>} : memref<32x128xf32, #tpu.memory_space<vmem>>, vector<1x128xf32>,
    %c127_i32 = arith.constant 127 : i32
    %55 = tpu.dynamic_rotate %2 by %c127_i32 dim 1 : vector<1x128xf32>, i32 -> vector<1x128xf32>
    %c104 = arith.constant 104 : index
    %c0_32 = arith.constant 0 : index
    %56 = vector.load %arg2[%c104, %c0_32] : memref<200x128xf32, #tpu.memory_space<vmem>>, vector<1x128xf32>
    %57 = arith.mulf %55, %56 : vector<1x128xf32>
    %c13 = arith.constant 13 : index
    %c0_33 = arith.constant 0 : index
    %58 = vector.load %arg10[%c13, %c0_33] : memref<32x128xf32, #tpu.memory_space<vmem>>, vector<1x128xf32>
    tpu.vector_store %arg10[%c13, %c0_33], %57 {strides = array<i32>} : memref<32x128xf32, #tpu.memory_space<vmem>>, vector<1x128xf32>,
    %c126_i32 = arith.constant 126 : i32
    %59 = tpu.dynamic_rotate %2 by %c126_i32 dim 1 : vector<1x128xf32>, i32 -> vector<1x128xf32>
    %c112 = arith.constant 112 : index
    %c0_34 = arith.constant 0 : index
    %60 = vector.load %arg2[%c112, %c0_34] : memref<200x128xf32, #tpu.memory_space<vmem>>, vector<1x128xf32>
    %61 = arith.mulf %59, %60 : vector<1x128xf32>
    %c14 = arith.constant 14 : index
    %c0_35 = arith.constant 0 : index
    %62 = vector.load %arg10[%c14, %c0_35] : memref<32x128xf32, #tpu.memory_space<vmem>>, vector<1x128xf32>
    tpu.vector_store %arg10[%c14, %c0_35], %61 {strides = array<i32>} : memref<32x128xf32, #tpu.memory_space<vmem>>, vector<1x128xf32>,
    %c122_i32 = arith.constant 122 : i32
    %63 = tpu.dynamic_rotate %2 by %c122_i32 dim 1 : vector<1x128xf32>, i32 -> vector<1x128xf32>
    %c120 = arith.constant 120 : index
    %c0_36 = arith.constant 0 : index
    %64 = vector.load %arg2[%c120, %c0_36] : memref<200x128xf32, #tpu.memory_space<vmem>>, vector<1x128xf32>
    %65 = arith.mulf %63, %64 : vector<1x128xf32>
    %c15 = arith.constant 15 : index
    %c0_37 = arith.constant 0 : index
    %66 = vector.load %arg10[%c15, %c0_37] : memref<32x128xf32, #tpu.memory_space<vmem>>, vector<1x128xf32>
    tpu.vector_store %arg10[%c15, %c0_37], %65 {strides = array<i32>} : memref<32x128xf32, #tpu.memory_space<vmem>>, vector<1x128xf32>,
    %c121_i32 = arith.constant 121 : i32
    %67 = tpu.dynamic_rotate %2 by %c121_i32 dim 1 : vector<1x128xf32>, i32 -> vector<1x128xf32>
    %c128 = arith.constant 128 : index
    %c0_38 = arith.constant 0 : index
    %68 = vector.load %arg2[%c128, %c0_38] : memref<200x128xf32, #tpu.memory_space<vmem>>, vector<1x128xf32>
    %69 = arith.mulf %67, %68 : vector<1x128xf32>
    %c16_39 = arith.constant 16 : index
    %c0_40 = arith.constant 0 : index
    %70 = vector.load %arg10[%c16_39, %c0_40] : memref<32x128xf32, #tpu.memory_space<vmem>>, vector<1x128xf32>
    tpu.vector_store %arg10[%c16_39, %c0_40], %69 {strides = array<i32>} : memref<32x128xf32, #tpu.memory_space<vmem>>, vector<1x128xf32>,
    %c120_i32 = arith.constant 120 : i32
    %71 = tpu.dynamic_rotate %2 by %c120_i32 dim 1 : vector<1x128xf32>, i32 -> vector<1x128xf32>
    %c136 = arith.constant 136 : index
    %c0_41 = arith.constant 0 : index
    %72 = vector.load %arg2[%c136, %c0_41] : memref<200x128xf32, #tpu.memory_space<vmem>>, vector<1x128xf32>
    %73 = arith.mulf %71, %72 : vector<1x128xf32>
    %c17 = arith.constant 17 : index
    %c0_42 = arith.constant 0 : index
    %74 = vector.load %arg10[%c17, %c0_42] : memref<32x128xf32, #tpu.memory_space<vmem>>, vector<1x128xf32>
    tpu.vector_store %arg10[%c17, %c0_42], %73 {strides = array<i32>} : memref<32x128xf32, #tpu.memory_space<vmem>>, vector<1x128xf32>,
    %c119_i32 = arith.constant 119 : i32
    %75 = tpu.dynamic_rotate %2 by %c119_i32 dim 1 : vector<1x128xf32>, i32 -> vector<1x128xf32>
    %c144 = arith.constant 144 : index
    %c0_43 = arith.constant 0 : index
    %76 = vector.load %arg2[%c144, %c0_43] : memref<200x128xf32, #tpu.memory_space<vmem>>, vector<1x128xf32>
    %77 = arith.mulf %75, %76 : vector<1x128xf32>
    %c18 = arith.constant 18 : index
    %c0_44 = arith.constant 0 : index
    %78 = vector.load %arg10[%c18, %c0_44] : memref<32x128xf32, #tpu.memory_space<vmem>>, vector<1x128xf32>
    tpu.vector_store %arg10[%c18, %c0_44], %77 {strides = array<i32>} : memref<32x128xf32, #tpu.memory_space<vmem>>, vector<1x128xf32>,
    %c118_i32 = arith.constant 118 : i32
    %79 = tpu.dynamic_rotate %2 by %c118_i32 dim 1 : vector<1x128xf32>, i32 -> vector<1x128xf32>
    %c152 = arith.constant 152 : index
    %c0_45 = arith.constant 0 : index
    %80 = vector.load %arg2[%c152, %c0_45] : memref<200x128xf32, #tpu.memory_space<vmem>>, vector<1x128xf32>
    %81 = arith.mulf %79, %80 : vector<1x128xf32>
    %c19 = arith.constant 19 : index
    %c0_46 = arith.constant 0 : index
    %82 = vector.load %arg10[%c19, %c0_46] : memref<32x128xf32, #tpu.memory_space<vmem>>, vector<1x128xf32>
    tpu.vector_store %arg10[%c19, %c0_46], %81 {strides = array<i32>} : memref<32x128xf32, #tpu.memory_space<vmem>>, vector<1x128xf32>,
    %c114_i32 = arith.constant 114 : i32
    %83 = tpu.dynamic_rotate %2 by %c114_i32 dim 1 : vector<1x128xf32>, i32 -> vector<1x128xf32>
    %c160 = arith.constant 160 : index
    %c0_47 = arith.constant 0 : index
    %84 = vector.load %arg2[%c160, %c0_47] : memref<200x128xf32, #tpu.memory_space<vmem>>, vector<1x128xf32>
    %85 = arith.mulf %83, %84 : vector<1x128xf32>
    %c20 = arith.constant 20 : index
    %c0_48 = arith.constant 0 : index
    %86 = vector.load %arg10[%c20, %c0_48] : memref<32x128xf32, #tpu.memory_space<vmem>>, vector<1x128xf32>
    tpu.vector_store %arg10[%c20, %c0_48], %85 {strides = array<i32>} : memref<32x128xf32, #tpu.memory_space<vmem>>, vector<1x128xf32>,
    %c113_i32 = arith.constant 113 : i32
    %87 = tpu.dynamic_rotate %2 by %c113_i32 dim 1 : vector<1x128xf32>, i32 -> vector<1x128xf32>
    %c168 = arith.constant 168 : index
    %c0_49 = arith.constant 0 : index
    %88 = vector.load %arg2[%c168, %c0_49] : memref<200x128xf32, #tpu.memory_space<vmem>>, vector<1x128xf32>
    %89 = arith.mulf %87, %88 : vector<1x128xf32>
    %c21 = arith.constant 21 : index
    %c0_50 = arith.constant 0 : index
    %90 = vector.load %arg10[%c21, %c0_50] : memref<32x128xf32, #tpu.memory_space<vmem>>, vector<1x128xf32>
    tpu.vector_store %arg10[%c21, %c0_50], %89 {strides = array<i32>} : memref<32x128xf32, #tpu.memory_space<vmem>>, vector<1x128xf32>,
    %c112_i32 = arith.constant 112 : i32
    %91 = tpu.dynamic_rotate %2 by %c112_i32 dim 1 : vector<1x128xf32>, i32 -> vector<1x128xf32>
    %c176 = arith.constant 176 : index
    %c0_51 = arith.constant 0 : index
    %92 = vector.load %arg2[%c176, %c0_51] : memref<200x128xf32, #tpu.memory_space<vmem>>, vector<1x128xf32>
    %93 = arith.mulf %91, %92 : vector<1x128xf32>
    %c22 = arith.constant 22 : index
    %c0_52 = arith.constant 0 : index
    %94 = vector.load %arg10[%c22, %c0_52] : memref<32x128xf32, #tpu.memory_space<vmem>>, vector<1x128xf32>
    tpu.vector_store %arg10[%c22, %c0_52], %93 {strides = array<i32>} : memref<32x128xf32, #tpu.memory_space<vmem>>, vector<1x128xf32>,
    %c111_i32 = arith.constant 111 : i32
    %95 = tpu.dynamic_rotate %2 by %c111_i32 dim 1 : vector<1x128xf32>, i32 -> vector<1x128xf32>
    %c184 = arith.constant 184 : index
    %c0_53 = arith.constant 0 : index
    %96 = vector.load %arg2[%c184, %c0_53] : memref<200x128xf32, #tpu.memory_space<vmem>>, vector<1x128xf32>
    %97 = arith.mulf %95, %96 : vector<1x128xf32>
    %c23 = arith.constant 23 : index
    %c0_54 = arith.constant 0 : index
    %98 = vector.load %arg10[%c23, %c0_54] : memref<32x128xf32, #tpu.memory_space<vmem>>, vector<1x128xf32>
    tpu.vector_store %arg10[%c23, %c0_54], %97 {strides = array<i32>} : memref<32x128xf32, #tpu.memory_space<vmem>>, vector<1x128xf32>,
    %c110_i32 = arith.constant 110 : i32
    %99 = tpu.dynamic_rotate %2 by %c110_i32 dim 1 : vector<1x128xf32>, i32 -> vector<1x128xf32>
    %c192 = arith.constant 192 : index
    %c0_55 = arith.constant 0 : index
    %100 = vector.load %arg2[%c192, %c0_55] : memref<200x128xf32, #tpu.memory_space<vmem>>, vector<1x128xf32>
    %101 = arith.mulf %99, %100 : vector<1x128xf32>
    %c24_56 = arith.constant 24 : index
    %c0_57 = arith.constant 0 : index
    %102 = vector.load %arg10[%c24_56, %c0_57] : memref<32x128xf32, #tpu.memory_space<vmem>>, vector<1x128xf32>
    tpu.vector_store %arg10[%c24_56, %c0_57], %101 {strides = array<i32>} : memref<32x128xf32, #tpu.memory_space<vmem>>, vector<1x128xf32>,
    %c0_58 = arith.constant 0 : index
    %c0_59 = arith.constant 0 : index
    %103 = vector.load %arg3[%c0_58, %c0_59] : memref<8x32xf32, #tpu.memory_space<vmem>>, vector<8x32xf32>
    %c0_60 = arith.constant 0 : index
    %c0_61 = arith.constant 0 : index
    %104 = vector.load %arg10[%c0_60, %c0_61] : memref<32x128xf32, #tpu.memory_space<vmem>>, vector<32x128xf32>
    %cst_62 = arith.constant dense<0.000000e+00> : vector<8x128xf32>
    %105 = tpu.matmul %103, %104, %cst_62 {dimension_numbers = #tpu.dot_dimension_numbers<[1], [0], [0], [1], [0, 0, 1, 1], [], []>} : vector<8x32xf32>, vector<32x128xf32>, vector<8x128xf32> -> vector<8x128xf32>
    %c0_63 = arith.constant 0 : index
    %c0_64 = arith.constant 0 : index
    %c0_65 = arith.constant 0 : index
    %106 = vector.load %arg5[%c0_63, %c0_64, %c0_65] : memref<3x8x1xf32, #tpu.memory_space<vmem>>, vector<1x8x1xf32>
    %107 = vector.shape_cast %106 : vector<1x8x1xf32> to vector<8x1xf32>
    %108 = vector.broadcast %107 : vector<8x1xf32> to vector<8x128xf32>
    %109 = arith.addf %105, %108 : vector<8x128xf32>
    %cst_66 = arith.constant 0.000000e+00 : f32
    %110 = vector.broadcast %cst_66 : f32 to vector<8x128xf32>
    %111 = arith.maximumf %109, %110 : vector<8x128xf32>
    %c18_i32_67 = arith.constant 18 : i32
    %112 = tpu.dynamic_rotate %111 by %c18_i32_67 dim 1 : vector<8x128xf32>, i32 -> vector<8x128xf32>
    %c0_68 = arith.constant 0 : index
    %c0_69 = arith.constant 0 : index
    %113 = vector.load %arg2[%c0_68, %c0_69] : memref<200x128xf32, #tpu.memory_space<vmem>>, vector<8x128xf32>
    %114 = arith.mulf %112, %113 : vector<8x128xf32>
    %c0_70 = arith.constant 0 : index
    %c0_71 = arith.constant 0 : index
    %115 = vector.load %arg11[%c0_70, %c0_71] : memref<200x128xf32, #tpu.memory_space<vmem>>, vector<8x128xf32>
    tpu.vector_store %arg11[%c0_70, %c0_71], %114 {strides = array<i32>} : memref<200x128xf32, #tpu.memory_space<vmem>>, vector<8x128xf32>,
    %c17_i32_72 = arith.constant 17 : i32
    %116 = tpu.dynamic_rotate %111 by %c17_i32_72 dim 1 : vector<8x128xf32>, i32 -> vector<8x128xf32>
    %c8_73 = arith.constant 8 : index
    %c0_74 = arith.constant 0 : index
    %117 = vector.load %arg2[%c8_73, %c0_74] : memref<200x128xf32, #tpu.memory_space<vmem>>, vector<8x128xf32>
    %118 = arith.mulf %116, %117 : vector<8x128xf32>
    %c8_75 = arith.constant 8 : index
    %c0_76 = arith.constant 0 : index
    %119 = vector.load %arg11[%c8_75, %c0_76] : memref<200x128xf32, #tpu.memory_space<vmem>>, vector<8x128xf32>
    tpu.vector_store %arg11[%c8_75, %c0_76], %118 {strides = array<i32>} : memref<200x128xf32, #tpu.memory_space<vmem>>, vector<8x128xf32>,
    %c16_i32_77 = arith.constant 16 : i32
    %120 = tpu.dynamic_rotate %111 by %c16_i32_77 dim 1 : vector<8x128xf32>, i32 -> vector<8x128xf32>
    %c16_78 = arith.constant 16 : index
    %c0_79 = arith.constant 0 : index
    %121 = vector.load %arg2[%c16_78, %c0_79] : memref<200x128xf32, #tpu.memory_space<vmem>>, vector<8x128xf32>
    %122 = arith.mulf %120, %121 : vector<8x128xf32>
    %c16_80 = arith.constant 16 : index
    %c0_81 = arith.constant 0 : index
    %123 = vector.load %arg11[%c16_80, %c0_81] : memref<200x128xf32, #tpu.memory_space<vmem>>, vector<8x128xf32>
    tpu.vector_store %arg11[%c16_80, %c0_81], %122 {strides = array<i32>} : memref<200x128xf32, #tpu.memory_space<vmem>>, vector<8x128xf32>,
    %c15_i32_82 = arith.constant 15 : i32
    %124 = tpu.dynamic_rotate %111 by %c15_i32_82 dim 1 : vector<8x128xf32>, i32 -> vector<8x128xf32>
    %c24_83 = arith.constant 24 : index
    %c0_84 = arith.constant 0 : index
    %125 = vector.load %arg2[%c24_83, %c0_84] : memref<200x128xf32, #tpu.memory_space<vmem>>, vector<8x128xf32>
    %126 = arith.mulf %124, %125 : vector<8x128xf32>
    %c24_85 = arith.constant 24 : index
    %c0_86 = arith.constant 0 : index
    %127 = vector.load %arg11[%c24_85, %c0_86] : memref<200x128xf32, #tpu.memory_space<vmem>>, vector<8x128xf32>
    tpu.vector_store %arg11[%c24_85, %c0_86], %126 {strides = array<i32>} : memref<200x128xf32, #tpu.memory_space<vmem>>, vector<8x128xf32>,
    %c14_i32_87 = arith.constant 14 : i32
    %128 = tpu.dynamic_rotate %111 by %c14_i32_87 dim 1 : vector<8x128xf32>, i32 -> vector<8x128xf32>
    %c32_88 = arith.constant 32 : index
    %c0_89 = arith.constant 0 : index
    %129 = vector.load %arg2[%c32_88, %c0_89] : memref<200x128xf32, #tpu.memory_space<vmem>>, vector<8x128xf32>
    %130 = arith.mulf %128, %129 : vector<8x128xf32>
    %c32_90 = arith.constant 32 : index
    %c0_91 = arith.constant 0 : index
    %131 = vector.load %arg11[%c32_90, %c0_91] : memref<200x128xf32, #tpu.memory_space<vmem>>, vector<8x128xf32>
    tpu.vector_store %arg11[%c32_90, %c0_91], %130 {strides = array<i32>} : memref<200x128xf32, #tpu.memory_space<vmem>>, vector<8x128xf32>,
    %c10_i32_92 = arith.constant 10 : i32
    %132 = tpu.dynamic_rotate %111 by %c10_i32_92 dim 1 : vector<8x128xf32>, i32 -> vector<8x128xf32>
    %c40_93 = arith.constant 40 : index
    %c0_94 = arith.constant 0 : index
    %133 = vector.load %arg2[%c40_93, %c0_94] : memref<200x128xf32, #tpu.memory_space<vmem>>, vector<8x128xf32>
    %134 = arith.mulf %132, %133 : vector<8x128xf32>
    %c40_95 = arith.constant 40 : index
    %c0_96 = arith.constant 0 : index
    %135 = vector.load %arg11[%c40_95, %c0_96] : memref<200x128xf32, #tpu.memory_space<vmem>>, vector<8x128xf32>
    tpu.vector_store %arg11[%c40_95, %c0_96], %134 {strides = array<i32>} : memref<200x128xf32, #tpu.memory_space<vmem>>, vector<8x128xf32>,
    %c9_i32_97 = arith.constant 9 : i32
    %136 = tpu.dynamic_rotate %111 by %c9_i32_97 dim 1 : vector<8x128xf32>, i32 -> vector<8x128xf32>
    %c48_98 = arith.constant 48 : index
    %c0_99 = arith.constant 0 : index
    %137 = vector.load %arg2[%c48_98, %c0_99] : memref<200x128xf32, #tpu.memory_space<vmem>>, vector<8x128xf32>
    %138 = arith.mulf %136, %137 : vector<8x128xf32>
    %c48_100 = arith.constant 48 : index
    %c0_101 = arith.constant 0 : index
    %139 = vector.load %arg11[%c48_100, %c0_101] : memref<200x128xf32, #tpu.memory_space<vmem>>, vector<8x128xf32>
    tpu.vector_store %arg11[%c48_100, %c0_101], %138 {strides = array<i32>} : memref<200x128xf32, #tpu.memory_space<vmem>>, vector<8x128xf32>,
    %c8_i32_102 = arith.constant 8 : i32
    %140 = tpu.dynamic_rotate %111 by %c8_i32_102 dim 1 : vector<8x128xf32>, i32 -> vector<8x128xf32>
    %c56_103 = arith.constant 56 : index
    %c0_104 = arith.constant 0 : index
    %141 = vector.load %arg2[%c56_103, %c0_104] : memref<200x128xf32, #tpu.memory_space<vmem>>, vector<8x128xf32>
    %142 = arith.mulf %140, %141 : vector<8x128xf32>
    %c56_105 = arith.constant 56 : index
    %c0_106 = arith.constant 0 : index
    %143 = vector.load %arg11[%c56_105, %c0_106] : memref<200x128xf32, #tpu.memory_space<vmem>>, vector<8x128xf32>
    tpu.vector_store %arg11[%c56_105, %c0_106], %142 {strides = array<i32>} : memref<200x128xf32, #tpu.memory_space<vmem>>, vector<8x128xf32>,
    %c7_i32_107 = arith.constant 7 : i32
    %144 = tpu.dynamic_rotate %111 by %c7_i32_107 dim 1 : vector<8x128xf32>, i32 -> vector<8x128xf32>
    %c64_108 = arith.constant 64 : index
    %c0_109 = arith.constant 0 : index
    %145 = vector.load %arg2[%c64_108, %c0_109] : memref<200x128xf32, #tpu.memory_space<vmem>>, vector<8x128xf32>
    %146 = arith.mulf %144, %145 : vector<8x128xf32>
    %c64_110 = arith.constant 64 : index
    %c0_111 = arith.constant 0 : index
    %147 = vector.load %arg11[%c64_110, %c0_111] : memref<200x128xf32, #tpu.memory_space<vmem>>, vector<8x128xf32>
    tpu.vector_store %arg11[%c64_110, %c0_111], %146 {strides = array<i32>} : memref<200x128xf32, #tpu.memory_space<vmem>>, vector<8x128xf32>,
    %c6_i32_112 = arith.constant 6 : i32
    %148 = tpu.dynamic_rotate %111 by %c6_i32_112 dim 1 : vector<8x128xf32>, i32 -> vector<8x128xf32>
    %c72_113 = arith.constant 72 : index
    %c0_114 = arith.constant 0 : index
    %149 = vector.load %arg2[%c72_113, %c0_114] : memref<200x128xf32, #tpu.memory_space<vmem>>, vector<8x128xf32>
    %150 = arith.mulf %148, %149 : vector<8x128xf32>
    %c72_115 = arith.constant 72 : index
    %c0_116 = arith.constant 0 : index
    %151 = vector.load %arg11[%c72_115, %c0_116] : memref<200x128xf32, #tpu.memory_space<vmem>>, vector<8x128xf32>
    tpu.vector_store %arg11[%c72_115, %c0_116], %150 {strides = array<i32>} : memref<200x128xf32, #tpu.memory_space<vmem>>, vector<8x128xf32>,
    %c2_i32_117 = arith.constant 2 : i32
    %152 = tpu.dynamic_rotate %111 by %c2_i32_117 dim 1 : vector<8x128xf32>, i32 -> vector<8x128xf32>
    %c80_118 = arith.constant 80 : index
    %c0_119 = arith.constant 0 : index
    %153 = vector.load %arg2[%c80_118, %c0_119] : memref<200x128xf32, #tpu.memory_space<vmem>>, vector<8x128xf32>
    %154 = arith.mulf %152, %153 : vector<8x128xf32>
    %c80_120 = arith.constant 80 : index
    %c0_121 = arith.constant 0 : index
    %155 = vector.load %arg11[%c80_120, %c0_121] : memref<200x128xf32, #tpu.memory_space<vmem>>, vector<8x128xf32>
    tpu.vector_store %arg11[%c80_120, %c0_121], %154 {strides = array<i32>} : memref<200x128xf32, #tpu.memory_space<vmem>>, vector<8x128xf32>,
    %c1_i32_122 = arith.constant 1 : i32
    %156 = tpu.dynamic_rotate %111 by %c1_i32_122 dim 1 : vector<8x128xf32>, i32 -> vector<8x128xf32>
    %c88_123 = arith.constant 88 : index
    %c0_124 = arith.constant 0 : index
    %157 = vector.load %arg2[%c88_123, %c0_124] : memref<200x128xf32, #tpu.memory_space<vmem>>, vector<8x128xf32>
    %158 = arith.mulf %156, %157 : vector<8x128xf32>
    %c88_125 = arith.constant 88 : index
    %c0_126 = arith.constant 0 : index
    %159 = vector.load %arg11[%c88_125, %c0_126] : memref<200x128xf32, #tpu.memory_space<vmem>>, vector<8x128xf32>
    tpu.vector_store %arg11[%c88_125, %c0_126], %158 {strides = array<i32>} : memref<200x128xf32, #tpu.memory_space<vmem>>, vector<8x128xf32>,
    %c0_i32_127 = arith.constant 0 : i32
    %160 = tpu.dynamic_rotate %111 by %c0_i32_127 dim 1 : vector<8x128xf32>, i32 -> vector<8x128xf32>
    %c96_128 = arith.constant 96 : index
    %c0_129 = arith.constant 0 : index
    %161 = vector.load %arg2[%c96_128, %c0_129] : memref<200x128xf32, #tpu.memory_space<vmem>>, vector<8x128xf32>
    %162 = arith.mulf %160, %161 : vector<8x128xf32>
    %c96_130 = arith.constant 96 : index
    %c0_131 = arith.constant 0 : index
    %163 = vector.load %arg11[%c96_130, %c0_131] : memref<200x128xf32, #tpu.memory_space<vmem>>, vector<8x128xf32>
    tpu.vector_store %arg11[%c96_130, %c0_131], %162 {strides = array<i32>} : memref<200x128xf32, #tpu.memory_space<vmem>>, vector<8x128xf32>,
    %c127_i32_132 = arith.constant 127 : i32
    %164 = tpu.dynamic_rotate %111 by %c127_i32_132 dim 1 : vector<8x128xf32>, i32 -> vector<8x128xf32>
    %c104_133 = arith.constant 104 : index
    %c0_134 = arith.constant 0 : index
    %165 = vector.load %arg2[%c104_133, %c0_134] : memref<200x128xf32, #tpu.memory_space<vmem>>, vector<8x128xf32>
    %166 = arith.mulf %164, %165 : vector<8x128xf32>
    %c104_135 = arith.constant 104 : index
    %c0_136 = arith.constant 0 : index
    %167 = vector.load %arg11[%c104_135, %c0_136] : memref<200x128xf32, #tpu.memory_space<vmem>>, vector<8x128xf32>
    tpu.vector_store %arg11[%c104_135, %c0_136], %166 {strides = array<i32>} : memref<200x128xf32, #tpu.memory_space<vmem>>, vector<8x128xf32>,
    %c126_i32_137 = arith.constant 126 : i32
    %168 = tpu.dynamic_rotate %111 by %c126_i32_137 dim 1 : vector<8x128xf32>, i32 -> vector<8x128xf32>
    %c112_138 = arith.constant 112 : index
    %c0_139 = arith.constant 0 : index
    %169 = vector.load %arg2[%c112_138, %c0_139] : memref<200x128xf32, #tpu.memory_space<vmem>>, vector<8x128xf32>
    %170 = arith.mulf %168, %169 : vector<8x128xf32>
    %c112_140 = arith.constant 112 : index
    %c0_141 = arith.constant 0 : index
    %171 = vector.load %arg11[%c112_140, %c0_141] : memref<200x128xf32, #tpu.memory_space<vmem>>, vector<8x128xf32>
    tpu.vector_store %arg11[%c112_140, %c0_141], %170 {strides = array<i32>} : memref<200x128xf32, #tpu.memory_space<vmem>>, vector<8x128xf32>,
    %c122_i32_142 = arith.constant 122 : i32
    %172 = tpu.dynamic_rotate %111 by %c122_i32_142 dim 1 : vector<8x128xf32>, i32 -> vector<8x128xf32>
    %c120_143 = arith.constant 120 : index
    %c0_144 = arith.constant 0 : index
    %173 = vector.load %arg2[%c120_143, %c0_144] : memref<200x128xf32, #tpu.memory_space<vmem>>, vector<8x128xf32>
    %174 = arith.mulf %172, %173 : vector<8x128xf32>
    %c120_145 = arith.constant 120 : index
    %c0_146 = arith.constant 0 : index
    %175 = vector.load %arg11[%c120_145, %c0_146] : memref<200x128xf32, #tpu.memory_space<vmem>>, vector<8x128xf32>
    tpu.vector_store %arg11[%c120_145, %c0_146], %174 {strides = array<i32>} : memref<200x128xf32, #tpu.memory_space<vmem>>, vector<8x128xf32>,
    %c121_i32_147 = arith.constant 121 : i32
    %176 = tpu.dynamic_rotate %111 by %c121_i32_147 dim 1 : vector<8x128xf32>, i32 -> vector<8x128xf32>
    %c128_148 = arith.constant 128 : index
    %c0_149 = arith.constant 0 : index
    %177 = vector.load %arg2[%c128_148, %c0_149] : memref<200x128xf32, #tpu.memory_space<vmem>>, vector<8x128xf32>
    %178 = arith.mulf %176, %177 : vector<8x128xf32>
    %c128_150 = arith.constant 128 : index
    %c0_151 = arith.constant 0 : index
    %179 = vector.load %arg11[%c128_150, %c0_151] : memref<200x128xf32, #tpu.memory_space<vmem>>, vector<8x128xf32>
    tpu.vector_store %arg11[%c128_150, %c0_151], %178 {strides = array<i32>} : memref<200x128xf32, #tpu.memory_space<vmem>>, vector<8x128xf32>,
    %c120_i32_152 = arith.constant 120 : i32
    %180 = tpu.dynamic_rotate %111 by %c120_i32_152 dim 1 : vector<8x128xf32>, i32 -> vector<8x128xf32>
    %c136_153 = arith.constant 136 : index
    %c0_154 = arith.constant 0 : index
    %181 = vector.load %arg2[%c136_153, %c0_154] : memref<200x128xf32, #tpu.memory_space<vmem>>, vector<8x128xf32>
    %182 = arith.mulf %180, %181 : vector<8x128xf32>
    %c136_155 = arith.constant 136 : index
    %c0_156 = arith.constant 0 : index
    %183 = vector.load %arg11[%c136_155, %c0_156] : memref<200x128xf32, #tpu.memory_space<vmem>>, vector<8x128xf32>
    tpu.vector_store %arg11[%c136_155, %c0_156], %182 {strides = array<i32>} : memref<200x128xf32, #tpu.memory_space<vmem>>, vector<8x128xf32>,
    %c119_i32_157 = arith.constant 119 : i32
    %184 = tpu.dynamic_rotate %111 by %c119_i32_157 dim 1 : vector<8x128xf32>, i32 -> vector<8x128xf32>
    %c144_158 = arith.constant 144 : index
    %c0_159 = arith.constant 0 : index
    %185 = vector.load %arg2[%c144_158, %c0_159] : memref<200x128xf32, #tpu.memory_space<vmem>>, vector<8x128xf32>
    %186 = arith.mulf %184, %185 : vector<8x128xf32>
    %c144_160 = arith.constant 144 : index
    %c0_161 = arith.constant 0 : index
    %187 = vector.load %arg11[%c144_160, %c0_161] : memref<200x128xf32, #tpu.memory_space<vmem>>, vector<8x128xf32>
    tpu.vector_store %arg11[%c144_160, %c0_161], %186 {strides = array<i32>} : memref<200x128xf32, #tpu.memory_space<vmem>>, vector<8x128xf32>,
    %c118_i32_162 = arith.constant 118 : i32
    %188 = tpu.dynamic_rotate %111 by %c118_i32_162 dim 1 : vector<8x128xf32>, i32 -> vector<8x128xf32>
    %c152_163 = arith.constant 152 : index
    %c0_164 = arith.constant 0 : index
    %189 = vector.load %arg2[%c152_163, %c0_164] : memref<200x128xf32, #tpu.memory_space<vmem>>, vector<8x128xf32>
    %190 = arith.mulf %188, %189 : vector<8x128xf32>
    %c152_165 = arith.constant 152 : index
    %c0_166 = arith.constant 0 : index
    %191 = vector.load %arg11[%c152_165, %c0_166] : memref<200x128xf32, #tpu.memory_space<vmem>>, vector<8x128xf32>
    tpu.vector_store %arg11[%c152_165, %c0_166], %190 {strides = array<i32>} : memref<200x128xf32, #tpu.memory_space<vmem>>, vector<8x128xf32>,
    %c114_i32_167 = arith.constant 114 : i32
    %192 = tpu.dynamic_rotate %111 by %c114_i32_167 dim 1 : vector<8x128xf32>, i32 -> vector<8x128xf32>
    %c160_168 = arith.constant 160 : index
    %c0_169 = arith.constant 0 : index
    %193 = vector.load %arg2[%c160_168, %c0_169] : memref<200x128xf32, #tpu.memory_space<vmem>>, vector<8x128xf32>
    %194 = arith.mulf %192, %193 : vector<8x128xf32>
    %c160_170 = arith.constant 160 : index
    %c0_171 = arith.constant 0 : index
    %195 = vector.load %arg11[%c160_170, %c0_171] : memref<200x128xf32, #tpu.memory_space<vmem>>, vector<8x128xf32>
    tpu.vector_store %arg11[%c160_170, %c0_171], %194 {strides = array<i32>} : memref<200x128xf32, #tpu.memory_space<vmem>>, vector<8x128xf32>,
    %c113_i32_172 = arith.constant 113 : i32
    %196 = tpu.dynamic_rotate %111 by %c113_i32_172 dim 1 : vector<8x128xf32>, i32 -> vector<8x128xf32>
    %c168_173 = arith.constant 168 : index
    %c0_174 = arith.constant 0 : index
    %197 = vector.load %arg2[%c168_173, %c0_174] : memref<200x128xf32, #tpu.memory_space<vmem>>, vector<8x128xf32>
    %198 = arith.mulf %196, %197 : vector<8x128xf32>
    %c168_175 = arith.constant 168 : index
    %c0_176 = arith.constant 0 : index
    %199 = vector.load %arg11[%c168_175, %c0_176] : memref<200x128xf32, #tpu.memory_space<vmem>>, vector<8x128xf32>
    tpu.vector_store %arg11[%c168_175, %c0_176], %198 {strides = array<i32>} : memref<200x128xf32, #tpu.memory_space<vmem>>, vector<8x128xf32>,
    %c112_i32_177 = arith.constant 112 : i32
    %200 = tpu.dynamic_rotate %111 by %c112_i32_177 dim 1 : vector<8x128xf32>, i32 -> vector<8x128xf32>
    %c176_178 = arith.constant 176 : index
    %c0_179 = arith.constant 0 : index
    %201 = vector.load %arg2[%c176_178, %c0_179] : memref<200x128xf32, #tpu.memory_space<vmem>>, vector<8x128xf32>
    %202 = arith.mulf %200, %201 : vector<8x128xf32>
    %c176_180 = arith.constant 176 : index
    %c0_181 = arith.constant 0 : index
    %203 = vector.load %arg11[%c176_180, %c0_181] : memref<200x128xf32, #tpu.memory_space<vmem>>, vector<8x128xf32>
    tpu.vector_store %arg11[%c176_180, %c0_181], %202 {strides = array<i32>} : memref<200x128xf32, #tpu.memory_space<vmem>>, vector<8x128xf32>,
    %c111_i32_182 = arith.constant 111 : i32
    %204 = tpu.dynamic_rotate %111 by %c111_i32_182 dim 1 : vector<8x128xf32>, i32 -> vector<8x128xf32>
    %c184_183 = arith.constant 184 : index
    %c0_184 = arith.constant 0 : index
    %205 = vector.load %arg2[%c184_183, %c0_184] : memref<200x128xf32, #tpu.memory_space<vmem>>, vector<8x128xf32>
    %206 = arith.mulf %204, %205 : vector<8x128xf32>
    %c184_185 = arith.constant 184 : index
    %c0_186 = arith.constant 0 : index
    %207 = vector.load %arg11[%c184_185, %c0_186] : memref<200x128xf32, #tpu.memory_space<vmem>>, vector<8x128xf32>
    tpu.vector_store %arg11[%c184_185, %c0_186], %206 {strides = array<i32>} : memref<200x128xf32, #tpu.memory_space<vmem>>, vector<8x128xf32>,
    %c110_i32_187 = arith.constant 110 : i32
    %208 = tpu.dynamic_rotate %111 by %c110_i32_187 dim 1 : vector<8x128xf32>, i32 -> vector<8x128xf32>
    %c192_188 = arith.constant 192 : index
    %c0_189 = arith.constant 0 : index
    %209 = vector.load %arg2[%c192_188, %c0_189] : memref<200x128xf32, #tpu.memory_space<vmem>>, vector<8x128xf32>
    %210 = arith.mulf %208, %209 : vector<8x128xf32>
    %c192_190 = arith.constant 192 : index
    %c0_191 = arith.constant 0 : index
    %211 = vector.load %arg11[%c192_190, %c0_191] : memref<200x128xf32, #tpu.memory_space<vmem>>, vector<8x128xf32>
    tpu.vector_store %arg11[%c192_190, %c0_191], %210 {strides = array<i32>} : memref<200x128xf32, #tpu.memory_space<vmem>>, vector<8x128xf32>,
    %c0_192 = arith.constant 0 : index
    %c0_193 = arith.constant 0 : index
    %c0_194 = arith.constant 0 : index
    %212 = vector.load %arg4[%c0_192, %c0_193, %c0_194] : memref<2x8x200xf32, #tpu.memory_space<vmem>>, vector<1x8x200xf32>
    %213 = vector.shape_cast %212 : vector<1x8x200xf32> to vector<8x200xf32>
    %c0_195 = arith.constant 0 : index
    %c0_196 = arith.constant 0 : index
    %214 = vector.load %arg11[%c0_195, %c0_196] : memref<200x128xf32, #tpu.memory_space<vmem>>, vector<200x128xf32>
    %cst_197 = arith.constant dense<0.000000e+00> : vector<8x128xf32>
    %215 = tpu.matmul %213, %214, %cst_197 {dimension_numbers = #tpu.dot_dimension_numbers<[1], [0], [0], [1], [0, 0, 1, 1], [], []>} : vector<8x200xf32>, vector<200x128xf32>, vector<8x128xf32> -> vector<8x128xf32>
    %c1_198 = arith.constant 1 : index
    %c0_199 = arith.constant 0 : index
    %c0_200 = arith.constant 0 : index
    %216 = vector.load %arg5[%c1_198, %c0_199, %c0_200] : memref<3x8x1xf32, #tpu.memory_space<vmem>>, vector<1x8x1xf32>
    %217 = vector.shape_cast %216 : vector<1x8x1xf32> to vector<8x1xf32>
    %218 = vector.broadcast %217 : vector<8x1xf32> to vector<8x128xf32>
    %219 = arith.addf %215, %218 : vector<8x128xf32>
    %cst_201 = arith.constant 0.000000e+00 : f32
    %220 = vector.broadcast %cst_201 : f32 to vector<8x128xf32>
    %221 = arith.maximumf %219, %220 : vector<8x128xf32>
    %c18_i32_202 = arith.constant 18 : i32
    %222 = tpu.dynamic_rotate %221 by %c18_i32_202 dim 1 : vector<8x128xf32>, i32 -> vector<8x128xf32>
    %c0_203 = arith.constant 0 : index
    %c0_204 = arith.constant 0 : index
    %223 = vector.load %arg2[%c0_203, %c0_204] : memref<200x128xf32, #tpu.memory_space<vmem>>, vector<8x128xf32>
    %224 = arith.mulf %222, %223 : vector<8x128xf32>
    %c0_205 = arith.constant 0 : index
    %c0_206 = arith.constant 0 : index
    %225 = vector.load %arg11[%c0_205, %c0_206] : memref<200x128xf32, #tpu.memory_space<vmem>>, vector<8x128xf32>
    tpu.vector_store %arg11[%c0_205, %c0_206], %224 {strides = array<i32>} : memref<200x128xf32, #tpu.memory_space<vmem>>, vector<8x128xf32>,
    %c17_i32_207 = arith.constant 17 : i32
    %226 = tpu.dynamic_rotate %221 by %c17_i32_207 dim 1 : vector<8x128xf32>, i32 -> vector<8x128xf32>
    %c8_208 = arith.constant 8 : index
    %c0_209 = arith.constant 0 : index
    %227 = vector.load %arg2[%c8_208, %c0_209] : memref<200x128xf32, #tpu.memory_space<vmem>>, vector<8x128xf32>
    %228 = arith.mulf %226, %227 : vector<8x128xf32>
    %c8_210 = arith.constant 8 : index
    %c0_211 = arith.constant 0 : index
    %229 = vector.load %arg11[%c8_210, %c0_211] : memref<200x128xf32, #tpu.memory_space<vmem>>, vector<8x128xf32>
    tpu.vector_store %arg11[%c8_210, %c0_211], %228 {strides = array<i32>} : memref<200x128xf32, #tpu.memory_space<vmem>>, vector<8x128xf32>,
    %c16_i32_212 = arith.constant 16 : i32
    %230 = tpu.dynamic_rotate %221 by %c16_i32_212 dim 1 : vector<8x128xf32>, i32 -> vector<8x128xf32>
    %c16_213 = arith.constant 16 : index
    %c0_214 = arith.constant 0 : index
    %231 = vector.load %arg2[%c16_213, %c0_214] : memref<200x128xf32, #tpu.memory_space<vmem>>, vector<8x128xf32>
    %232 = arith.mulf %230, %231 : vector<8x128xf32>
    %c16_215 = arith.constant 16 : index
    %c0_216 = arith.constant 0 : index
    %233 = vector.load %arg11[%c16_215, %c0_216] : memref<200x128xf32, #tpu.memory_space<vmem>>, vector<8x128xf32>
    tpu.vector_store %arg11[%c16_215, %c0_216], %232 {strides = array<i32>} : memref<200x128xf32, #tpu.memory_space<vmem>>, vector<8x128xf32>,
    %c15_i32_217 = arith.constant 15 : i32
    %234 = tpu.dynamic_rotate %221 by %c15_i32_217 dim 1 : vector<8x128xf32>, i32 -> vector<8x128xf32>
    %c24_218 = arith.constant 24 : index
    %c0_219 = arith.constant 0 : index
    %235 = vector.load %arg2[%c24_218, %c0_219] : memref<200x128xf32, #tpu.memory_space<vmem>>, vector<8x128xf32>
    %236 = arith.mulf %234, %235 : vector<8x128xf32>
    %c24_220 = arith.constant 24 : index
    %c0_221 = arith.constant 0 : index
    %237 = vector.load %arg11[%c24_220, %c0_221] : memref<200x128xf32, #tpu.memory_space<vmem>>, vector<8x128xf32>
    tpu.vector_store %arg11[%c24_220, %c0_221], %236 {strides = array<i32>} : memref<200x128xf32, #tpu.memory_space<vmem>>, vector<8x128xf32>,
    %c14_i32_222 = arith.constant 14 : i32
    %238 = tpu.dynamic_rotate %221 by %c14_i32_222 dim 1 : vector<8x128xf32>, i32 -> vector<8x128xf32>
    %c32_223 = arith.constant 32 : index
    %c0_224 = arith.constant 0 : index
    %239 = vector.load %arg2[%c32_223, %c0_224] : memref<200x128xf32, #tpu.memory_space<vmem>>, vector<8x128xf32>
    %240 = arith.mulf %238, %239 : vector<8x128xf32>
    %c32_225 = arith.constant 32 : index
    %c0_226 = arith.constant 0 : index
    %241 = vector.load %arg11[%c32_225, %c0_226] : memref<200x128xf32, #tpu.memory_space<vmem>>, vector<8x128xf32>
    tpu.vector_store %arg11[%c32_225, %c0_226], %240 {strides = array<i32>} : memref<200x128xf32, #tpu.memory_space<vmem>>, vector<8x128xf32>,
    %c10_i32_227 = arith.constant 10 : i32
    %242 = tpu.dynamic_rotate %221 by %c10_i32_227 dim 1 : vector<8x128xf32>, i32 -> vector<8x128xf32>
    %c40_228 = arith.constant 40 : index
    %c0_229 = arith.constant 0 : index
    %243 = vector.load %arg2[%c40_228, %c0_229] : memref<200x128xf32, #tpu.memory_space<vmem>>, vector<8x128xf32>
    %244 = arith.mulf %242, %243 : vector<8x128xf32>
    %c40_230 = arith.constant 40 : index
    %c0_231 = arith.constant 0 : index
    %245 = vector.load %arg11[%c40_230, %c0_231] : memref<200x128xf32, #tpu.memory_space<vmem>>, vector<8x128xf32>
    tpu.vector_store %arg11[%c40_230, %c0_231], %244 {strides = array<i32>} : memref<200x128xf32, #tpu.memory_space<vmem>>, vector<8x128xf32>,
    %c9_i32_232 = arith.constant 9 : i32
    %246 = tpu.dynamic_rotate %221 by %c9_i32_232 dim 1 : vector<8x128xf32>, i32 -> vector<8x128xf32>
    %c48_233 = arith.constant 48 : index
    %c0_234 = arith.constant 0 : index
    %247 = vector.load %arg2[%c48_233, %c0_234] : memref<200x128xf32, #tpu.memory_space<vmem>>, vector<8x128xf32>
    %248 = arith.mulf %246, %247 : vector<8x128xf32>
    %c48_235 = arith.constant 48 : index
    %c0_236 = arith.constant 0 : index
    %249 = vector.load %arg11[%c48_235, %c0_236] : memref<200x128xf32, #tpu.memory_space<vmem>>, vector<8x128xf32>
    tpu.vector_store %arg11[%c48_235, %c0_236], %248 {strides = array<i32>} : memref<200x128xf32, #tpu.memory_space<vmem>>, vector<8x128xf32>,
    %c8_i32_237 = arith.constant 8 : i32
    %250 = tpu.dynamic_rotate %221 by %c8_i32_237 dim 1 : vector<8x128xf32>, i32 -> vector<8x128xf32>
    %c56_238 = arith.constant 56 : index
    %c0_239 = arith.constant 0 : index
    %251 = vector.load %arg2[%c56_238, %c0_239] : memref<200x128xf32, #tpu.memory_space<vmem>>, vector<8x128xf32>
    %252 = arith.mulf %250, %251 : vector<8x128xf32>
    %c56_240 = arith.constant 56 : index
    %c0_241 = arith.constant 0 : index
    %253 = vector.load %arg11[%c56_240, %c0_241] : memref<200x128xf32, #tpu.memory_space<vmem>>, vector<8x128xf32>
    tpu.vector_store %arg11[%c56_240, %c0_241], %252 {strides = array<i32>} : memref<200x128xf32, #tpu.memory_space<vmem>>, vector<8x128xf32>,
    %c7_i32_242 = arith.constant 7 : i32
    %254 = tpu.dynamic_rotate %221 by %c7_i32_242 dim 1 : vector<8x128xf32>, i32 -> vector<8x128xf32>
    %c64_243 = arith.constant 64 : index
    %c0_244 = arith.constant 0 : index
    %255 = vector.load %arg2[%c64_243, %c0_244] : memref<200x128xf32, #tpu.memory_space<vmem>>, vector<8x128xf32>
    %256 = arith.mulf %254, %255 : vector<8x128xf32>
    %c64_245 = arith.constant 64 : index
    %c0_246 = arith.constant 0 : index
    %257 = vector.load %arg11[%c64_245, %c0_246] : memref<200x128xf32, #tpu.memory_space<vmem>>, vector<8x128xf32>
    tpu.vector_store %arg11[%c64_245, %c0_246], %256 {strides = array<i32>} : memref<200x128xf32, #tpu.memory_space<vmem>>, vector<8x128xf32>,
    %c6_i32_247 = arith.constant 6 : i32
    %258 = tpu.dynamic_rotate %221 by %c6_i32_247 dim 1 : vector<8x128xf32>, i32 -> vector<8x128xf32>
    %c72_248 = arith.constant 72 : index
    %c0_249 = arith.constant 0 : index
    %259 = vector.load %arg2[%c72_248, %c0_249] : memref<200x128xf32, #tpu.memory_space<vmem>>, vector<8x128xf32>
    %260 = arith.mulf %258, %259 : vector<8x128xf32>
    %c72_250 = arith.constant 72 : index
    %c0_251 = arith.constant 0 : index
    %261 = vector.load %arg11[%c72_250, %c0_251] : memref<200x128xf32, #tpu.memory_space<vmem>>, vector<8x128xf32>
    tpu.vector_store %arg11[%c72_250, %c0_251], %260 {strides = array<i32>} : memref<200x128xf32, #tpu.memory_space<vmem>>, vector<8x128xf32>,
    %c2_i32_252 = arith.constant 2 : i32
    %262 = tpu.dynamic_rotate %221 by %c2_i32_252 dim 1 : vector<8x128xf32>, i32 -> vector<8x128xf32>
    %c80_253 = arith.constant 80 : index
    %c0_254 = arith.constant 0 : index
    %263 = vector.load %arg2[%c80_253, %c0_254] : memref<200x128xf32, #tpu.memory_space<vmem>>, vector<8x128xf32>
    %264 = arith.mulf %262, %263 : vector<8x128xf32>
    %c80_255 = arith.constant 80 : index
    %c0_256 = arith.constant 0 : index
    %265 = vector.load %arg11[%c80_255, %c0_256] : memref<200x128xf32, #tpu.memory_space<vmem>>, vector<8x128xf32>
    tpu.vector_store %arg11[%c80_255, %c0_256], %264 {strides = array<i32>} : memref<200x128xf32, #tpu.memory_space<vmem>>, vector<8x128xf32>,
    %c1_i32_257 = arith.constant 1 : i32
    %266 = tpu.dynamic_rotate %221 by %c1_i32_257 dim 1 : vector<8x128xf32>, i32 -> vector<8x128xf32>
    %c88_258 = arith.constant 88 : index
    %c0_259 = arith.constant 0 : index
    %267 = vector.load %arg2[%c88_258, %c0_259] : memref<200x128xf32, #tpu.memory_space<vmem>>, vector<8x128xf32>
    %268 = arith.mulf %266, %267 : vector<8x128xf32>
    %c88_260 = arith.constant 88 : index
    %c0_261 = arith.constant 0 : index
    %269 = vector.load %arg11[%c88_260, %c0_261] : memref<200x128xf32, #tpu.memory_space<vmem>>, vector<8x128xf32>
    tpu.vector_store %arg11[%c88_260, %c0_261], %268 {strides = array<i32>} : memref<200x128xf32, #tpu.memory_space<vmem>>, vector<8x128xf32>,
    %c0_i32_262 = arith.constant 0 : i32
    %270 = tpu.dynamic_rotate %221 by %c0_i32_262 dim 1 : vector<8x128xf32>, i32 -> vector<8x128xf32>
    %c96_263 = arith.constant 96 : index
    %c0_264 = arith.constant 0 : index
    %271 = vector.load %arg2[%c96_263, %c0_264] : memref<200x128xf32, #tpu.memory_space<vmem>>, vector<8x128xf32>
    %272 = arith.mulf %270, %271 : vector<8x128xf32>
    %c96_265 = arith.constant 96 : index
    %c0_266 = arith.constant 0 : index
    %273 = vector.load %arg11[%c96_265, %c0_266] : memref<200x128xf32, #tpu.memory_space<vmem>>, vector<8x128xf32>
    tpu.vector_store %arg11[%c96_265, %c0_266], %272 {strides = array<i32>} : memref<200x128xf32, #tpu.memory_space<vmem>>, vector<8x128xf32>,
    %c127_i32_267 = arith.constant 127 : i32
    %274 = tpu.dynamic_rotate %221 by %c127_i32_267 dim 1 : vector<8x128xf32>, i32 -> vector<8x128xf32>
    %c104_268 = arith.constant 104 : index
    %c0_269 = arith.constant 0 : index
    %275 = vector.load %arg2[%c104_268, %c0_269] : memref<200x128xf32, #tpu.memory_space<vmem>>, vector<8x128xf32>
    %276 = arith.mulf %274, %275 : vector<8x128xf32>
    %c104_270 = arith.constant 104 : index
    %c0_271 = arith.constant 0 : index
    %277 = vector.load %arg11[%c104_270, %c0_271] : memref<200x128xf32, #tpu.memory_space<vmem>>, vector<8x128xf32>
    tpu.vector_store %arg11[%c104_270, %c0_271], %276 {strides = array<i32>} : memref<200x128xf32, #tpu.memory_space<vmem>>, vector<8x128xf32>,
    %c126_i32_272 = arith.constant 126 : i32
    %278 = tpu.dynamic_rotate %221 by %c126_i32_272 dim 1 : vector<8x128xf32>, i32 -> vector<8x128xf32>
    %c112_273 = arith.constant 112 : index
    %c0_274 = arith.constant 0 : index
    %279 = vector.load %arg2[%c112_273, %c0_274] : memref<200x128xf32, #tpu.memory_space<vmem>>, vector<8x128xf32>
    %280 = arith.mulf %278, %279 : vector<8x128xf32>
    %c112_275 = arith.constant 112 : index
    %c0_276 = arith.constant 0 : index
    %281 = vector.load %arg11[%c112_275, %c0_276] : memref<200x128xf32, #tpu.memory_space<vmem>>, vector<8x128xf32>
    tpu.vector_store %arg11[%c112_275, %c0_276], %280 {strides = array<i32>} : memref<200x128xf32, #tpu.memory_space<vmem>>, vector<8x128xf32>,
    %c122_i32_277 = arith.constant 122 : i32
    %282 = tpu.dynamic_rotate %221 by %c122_i32_277 dim 1 : vector<8x128xf32>, i32 -> vector<8x128xf32>
    %c120_278 = arith.constant 120 : index
    %c0_279 = arith.constant 0 : index
    %283 = vector.load %arg2[%c120_278, %c0_279] : memref<200x128xf32, #tpu.memory_space<vmem>>, vector<8x128xf32>
    %284 = arith.mulf %282, %283 : vector<8x128xf32>
    %c120_280 = arith.constant 120 : index
    %c0_281 = arith.constant 0 : index
    %285 = vector.load %arg11[%c120_280, %c0_281] : memref<200x128xf32, #tpu.memory_space<vmem>>, vector<8x128xf32>
    tpu.vector_store %arg11[%c120_280, %c0_281], %284 {strides = array<i32>} : memref<200x128xf32, #tpu.memory_space<vmem>>, vector<8x128xf32>,
    %c121_i32_282 = arith.constant 121 : i32
    %286 = tpu.dynamic_rotate %221 by %c121_i32_282 dim 1 : vector<8x128xf32>, i32 -> vector<8x128xf32>
    %c128_283 = arith.constant 128 : index
    %c0_284 = arith.constant 0 : index
    %287 = vector.load %arg2[%c128_283, %c0_284] : memref<200x128xf32, #tpu.memory_space<vmem>>, vector<8x128xf32>
    %288 = arith.mulf %286, %287 : vector<8x128xf32>
    %c128_285 = arith.constant 128 : index
    %c0_286 = arith.constant 0 : index
    %289 = vector.load %arg11[%c128_285, %c0_286] : memref<200x128xf32, #tpu.memory_space<vmem>>, vector<8x128xf32>
    tpu.vector_store %arg11[%c128_285, %c0_286], %288 {strides = array<i32>} : memref<200x128xf32, #tpu.memory_space<vmem>>, vector<8x128xf32>,
    %c120_i32_287 = arith.constant 120 : i32
    %290 = tpu.dynamic_rotate %221 by %c120_i32_287 dim 1 : vector<8x128xf32>, i32 -> vector<8x128xf32>
    %c136_288 = arith.constant 136 : index
    %c0_289 = arith.constant 0 : index
    %291 = vector.load %arg2[%c136_288, %c0_289] : memref<200x128xf32, #tpu.memory_space<vmem>>, vector<8x128xf32>
    %292 = arith.mulf %290, %291 : vector<8x128xf32>
    %c136_290 = arith.constant 136 : index
    %c0_291 = arith.constant 0 : index
    %293 = vector.load %arg11[%c136_290, %c0_291] : memref<200x128xf32, #tpu.memory_space<vmem>>, vector<8x128xf32>
    tpu.vector_store %arg11[%c136_290, %c0_291], %292 {strides = array<i32>} : memref<200x128xf32, #tpu.memory_space<vmem>>, vector<8x128xf32>,
    %c119_i32_292 = arith.constant 119 : i32
    %294 = tpu.dynamic_rotate %221 by %c119_i32_292 dim 1 : vector<8x128xf32>, i32 -> vector<8x128xf32>
    %c144_293 = arith.constant 144 : index
    %c0_294 = arith.constant 0 : index
    %295 = vector.load %arg2[%c144_293, %c0_294] : memref<200x128xf32, #tpu.memory_space<vmem>>, vector<8x128xf32>
    %296 = arith.mulf %294, %295 : vector<8x128xf32>
    %c144_295 = arith.constant 144 : index
    %c0_296 = arith.constant 0 : index
    %297 = vector.load %arg11[%c144_295, %c0_296] : memref<200x128xf32, #tpu.memory_space<vmem>>, vector<8x128xf32>
    tpu.vector_store %arg11[%c144_295, %c0_296], %296 {strides = array<i32>} : memref<200x128xf32, #tpu.memory_space<vmem>>, vector<8x128xf32>,
    %c118_i32_297 = arith.constant 118 : i32
    %298 = tpu.dynamic_rotate %221 by %c118_i32_297 dim 1 : vector<8x128xf32>, i32 -> vector<8x128xf32>
    %c152_298 = arith.constant 152 : index
    %c0_299 = arith.constant 0 : index
    %299 = vector.load %arg2[%c152_298, %c0_299] : memref<200x128xf32, #tpu.memory_space<vmem>>, vector<8x128xf32>
    %300 = arith.mulf %298, %299 : vector<8x128xf32>
    %c152_300 = arith.constant 152 : index
    %c0_301 = arith.constant 0 : index
    %301 = vector.load %arg11[%c152_300, %c0_301] : memref<200x128xf32, #tpu.memory_space<vmem>>, vector<8x128xf32>
    tpu.vector_store %arg11[%c152_300, %c0_301], %300 {strides = array<i32>} : memref<200x128xf32, #tpu.memory_space<vmem>>, vector<8x128xf32>,
    %c114_i32_302 = arith.constant 114 : i32
    %302 = tpu.dynamic_rotate %221 by %c114_i32_302 dim 1 : vector<8x128xf32>, i32 -> vector<8x128xf32>
    %c160_303 = arith.constant 160 : index
    %c0_304 = arith.constant 0 : index
    %303 = vector.load %arg2[%c160_303, %c0_304] : memref<200x128xf32, #tpu.memory_space<vmem>>, vector<8x128xf32>
    %304 = arith.mulf %302, %303 : vector<8x128xf32>
    %c160_305 = arith.constant 160 : index
    %c0_306 = arith.constant 0 : index
    %305 = vector.load %arg11[%c160_305, %c0_306] : memref<200x128xf32, #tpu.memory_space<vmem>>, vector<8x128xf32>
    tpu.vector_store %arg11[%c160_305, %c0_306], %304 {strides = array<i32>} : memref<200x128xf32, #tpu.memory_space<vmem>>, vector<8x128xf32>,
    %c113_i32_307 = arith.constant 113 : i32
    %306 = tpu.dynamic_rotate %221 by %c113_i32_307 dim 1 : vector<8x128xf32>, i32 -> vector<8x128xf32>
    %c168_308 = arith.constant 168 : index
    %c0_309 = arith.constant 0 : index
    %307 = vector.load %arg2[%c168_308, %c0_309] : memref<200x128xf32, #tpu.memory_space<vmem>>, vector<8x128xf32>
    %308 = arith.mulf %306, %307 : vector<8x128xf32>
    %c168_310 = arith.constant 168 : index
    %c0_311 = arith.constant 0 : index
    %309 = vector.load %arg11[%c168_310, %c0_311] : memref<200x128xf32, #tpu.memory_space<vmem>>, vector<8x128xf32>
    tpu.vector_store %arg11[%c168_310, %c0_311], %308 {strides = array<i32>} : memref<200x128xf32, #tpu.memory_space<vmem>>, vector<8x128xf32>,
    %c112_i32_312 = arith.constant 112 : i32
    %310 = tpu.dynamic_rotate %221 by %c112_i32_312 dim 1 : vector<8x128xf32>, i32 -> vector<8x128xf32>
    %c176_313 = arith.constant 176 : index
    %c0_314 = arith.constant 0 : index
    %311 = vector.load %arg2[%c176_313, %c0_314] : memref<200x128xf32, #tpu.memory_space<vmem>>, vector<8x128xf32>
    %312 = arith.mulf %310, %311 : vector<8x128xf32>
    %c176_315 = arith.constant 176 : index
    %c0_316 = arith.constant 0 : index
    %313 = vector.load %arg11[%c176_315, %c0_316] : memref<200x128xf32, #tpu.memory_space<vmem>>, vector<8x128xf32>
    tpu.vector_store %arg11[%c176_315, %c0_316], %312 {strides = array<i32>} : memref<200x128xf32, #tpu.memory_space<vmem>>, vector<8x128xf32>,
    %c111_i32_317 = arith.constant 111 : i32
    %314 = tpu.dynamic_rotate %221 by %c111_i32_317 dim 1 : vector<8x128xf32>, i32 -> vector<8x128xf32>
    %c184_318 = arith.constant 184 : index
    %c0_319 = arith.constant 0 : index
    %315 = vector.load %arg2[%c184_318, %c0_319] : memref<200x128xf32, #tpu.memory_space<vmem>>, vector<8x128xf32>
    %316 = arith.mulf %314, %315 : vector<8x128xf32>
    %c184_320 = arith.constant 184 : index
    %c0_321 = arith.constant 0 : index
    %317 = vector.load %arg11[%c184_320, %c0_321] : memref<200x128xf32, #tpu.memory_space<vmem>>, vector<8x128xf32>
    tpu.vector_store %arg11[%c184_320, %c0_321], %316 {strides = array<i32>} : memref<200x128xf32, #tpu.memory_space<vmem>>, vector<8x128xf32>,
    %c110_i32_322 = arith.constant 110 : i32
    %318 = tpu.dynamic_rotate %221 by %c110_i32_322 dim 1 : vector<8x128xf32>, i32 -> vector<8x128xf32>
    %c192_323 = arith.constant 192 : index
    %c0_324 = arith.constant 0 : index
    %319 = vector.load %arg2[%c192_323, %c0_324] : memref<200x128xf32, #tpu.memory_space<vmem>>, vector<8x128xf32>
    %320 = arith.mulf %318, %319 : vector<8x128xf32>
    %c192_325 = arith.constant 192 : index
    %c0_326 = arith.constant 0 : index
    %321 = vector.load %arg11[%c192_325, %c0_326] : memref<200x128xf32, #tpu.memory_space<vmem>>, vector<8x128xf32>
    tpu.vector_store %arg11[%c192_325, %c0_326], %320 {strides = array<i32>} : memref<200x128xf32, #tpu.memory_space<vmem>>, vector<8x128xf32>,
    %c1_327 = arith.constant 1 : index
    %c0_328 = arith.constant 0 : index
    %c0_329 = arith.constant 0 : index
    %322 = vector.load %arg4[%c1_327, %c0_328, %c0_329] : memref<2x8x200xf32, #tpu.memory_space<vmem>>, vector<1x8x200xf32>
    %323 = vector.shape_cast %322 : vector<1x8x200xf32> to vector<8x200xf32>
    %c0_330 = arith.constant 0 : index
    %c0_331 = arith.constant 0 : index
    %324 = vector.load %arg11[%c0_330, %c0_331] : memref<200x128xf32, #tpu.memory_space<vmem>>, vector<200x128xf32>
    %cst_332 = arith.constant dense<0.000000e+00> : vector<8x128xf32>
    %325 = tpu.matmul %323, %324, %cst_332 {dimension_numbers = #tpu.dot_dimension_numbers<[1], [0], [0], [1], [0, 0, 1, 1], [], []>} : vector<8x200xf32>, vector<200x128xf32>, vector<8x128xf32> -> vector<8x128xf32>
    %c2_333 = arith.constant 2 : index
    %c0_334 = arith.constant 0 : index
    %c0_335 = arith.constant 0 : index
    %326 = vector.load %arg5[%c2_333, %c0_334, %c0_335] : memref<3x8x1xf32, #tpu.memory_space<vmem>>, vector<1x8x1xf32>
    %327 = vector.shape_cast %326 : vector<1x8x1xf32> to vector<8x1xf32>
    %328 = vector.broadcast %327 : vector<8x1xf32> to vector<8x128xf32>
    %329 = arith.addf %325, %328 : vector<8x128xf32>
    %cst_336 = arith.constant 0.000000e+00 : f32
    %330 = vector.broadcast %cst_336 : f32 to vector<8x128xf32>
    %331 = arith.maximumf %329, %330 : vector<8x128xf32>
    %c0_337 = arith.constant 0 : index
    %c0_338 = arith.constant 0 : index
    %c0_339 = arith.constant 0 : index
    %332 = vector.load %arg6[%c0_337, %c0_338, %c0_339] : memref<5x8x128xf32, #tpu.memory_space<vmem>>, vector<1x8x128xf32>
    %333 = vector.shape_cast %332 : vector<1x8x128xf32> to vector<8x128xf32>
    %334 = arith.mulf %331, %333 : vector<8x128xf32>
    %cst_340 = arith.constant dense<0.000000e+00> : vector<128xf32>
    %335 = vector.multi_reduction <add>, %334, %cst_340 [0] : vector<8x128xf32> to vector<128xf32>
    %336 = vector.shape_cast %335 : vector<128xf32> to vector<1x128xf32>
    %c0_341 = arith.constant 0 : index
    %c0_342 = arith.constant 0 : index
    %337 = vector.load %arg12[%c0_341, %c0_342] : memref<5x128xf32, #tpu.memory_space<vmem>>, vector<1x128xf32>
    tpu.vector_store %arg12[%c0_341, %c0_342], %336 {strides = array<i32>} : memref<5x128xf32, #tpu.memory_space<vmem>>, vector<1x128xf32>,
    %c1_343 = arith.constant 1 : index
    %c0_344 = arith.constant 0 : index
    %c0_345 = arith.constant 0 : index
    %338 = vector.load %arg6[%c1_343, %c0_344, %c0_345] : memref<5x8x128xf32, #tpu.memory_space<vmem>>, vector<1x8x128xf32>
    %339 = vector.shape_cast %338 : vector<1x8x128xf32> to vector<8x128xf32>
    %340 = arith.mulf %331, %339 : vector<8x128xf32>
    %cst_346 = arith.constant dense<0.000000e+00> : vector<128xf32>
    %341 = vector.multi_reduction <add>, %340, %cst_346 [0] : vector<8x128xf32> to vector<128xf32>
    %342 = vector.shape_cast %341 : vector<128xf32> to vector<1x128xf32>
    %c1_347 = arith.constant 1 : index
    %c0_348 = arith.constant 0 : index
    %343 = vector.load %arg12[%c1_347, %c0_348] : memref<5x128xf32, #tpu.memory_space<vmem>>, vector<1x128xf32>
    tpu.vector_store %arg12[%c1_347, %c0_348], %342 {strides = array<i32>} : memref<5x128xf32, #tpu.memory_space<vmem>>, vector<1x128xf32>,
    %c2_349 = arith.constant 2 : index
    %c0_350 = arith.constant 0 : index
    %c0_351 = arith.constant 0 : index
    %344 = vector.load %arg6[%c2_349, %c0_350, %c0_351] : memref<5x8x128xf32, #tpu.memory_space<vmem>>, vector<1x8x128xf32>
    %345 = vector.shape_cast %344 : vector<1x8x128xf32> to vector<8x128xf32>
    %346 = arith.mulf %331, %345 : vector<8x128xf32>
    %cst_352 = arith.constant dense<0.000000e+00> : vector<128xf32>
    %347 = vector.multi_reduction <add>, %346, %cst_352 [0] : vector<8x128xf32> to vector<128xf32>
    %348 = vector.shape_cast %347 : vector<128xf32> to vector<1x128xf32>
    %c2_353 = arith.constant 2 : index
    %c0_354 = arith.constant 0 : index
    %349 = vector.load %arg12[%c2_353, %c0_354] : memref<5x128xf32, #tpu.memory_space<vmem>>, vector<1x128xf32>
    tpu.vector_store %arg12[%c2_353, %c0_354], %348 {strides = array<i32>} : memref<5x128xf32, #tpu.memory_space<vmem>>, vector<1x128xf32>,
    %c3_355 = arith.constant 3 : index
    %c0_356 = arith.constant 0 : index
    %c0_357 = arith.constant 0 : index
    %350 = vector.load %arg6[%c3_355, %c0_356, %c0_357] : memref<5x8x128xf32, #tpu.memory_space<vmem>>, vector<1x8x128xf32>
    %351 = vector.shape_cast %350 : vector<1x8x128xf32> to vector<8x128xf32>
    %352 = arith.mulf %331, %351 : vector<8x128xf32>
    %cst_358 = arith.constant dense<0.000000e+00> : vector<128xf32>
    %353 = vector.multi_reduction <add>, %352, %cst_358 [0] : vector<8x128xf32> to vector<128xf32>
    %354 = vector.shape_cast %353 : vector<128xf32> to vector<1x128xf32>
    %c3_359 = arith.constant 3 : index
    %c0_360 = arith.constant 0 : index
    %355 = vector.load %arg12[%c3_359, %c0_360] : memref<5x128xf32, #tpu.memory_space<vmem>>, vector<1x128xf32>
    tpu.vector_store %arg12[%c3_359, %c0_360], %354 {strides = array<i32>} : memref<5x128xf32, #tpu.memory_space<vmem>>, vector<1x128xf32>,
    %c4_361 = arith.constant 4 : index
    %c0_362 = arith.constant 0 : index
    %c0_363 = arith.constant 0 : index
    %356 = vector.load %arg6[%c4_361, %c0_362, %c0_363] : memref<5x8x128xf32, #tpu.memory_space<vmem>>, vector<1x8x128xf32>
    %357 = vector.shape_cast %356 : vector<1x8x128xf32> to vector<8x128xf32>
    %358 = arith.mulf %331, %357 : vector<8x128xf32>
    %cst_364 = arith.constant dense<0.000000e+00> : vector<128xf32>
    %359 = vector.multi_reduction <add>, %358, %cst_364 [0] : vector<8x128xf32> to vector<128xf32>
    %360 = vector.shape_cast %359 : vector<128xf32> to vector<1x128xf32>
    %c4_365 = arith.constant 4 : index
    %c0_366 = arith.constant 0 : index
    %361 = vector.load %arg12[%c4_365, %c0_366] : memref<5x128xf32, #tpu.memory_space<vmem>>, vector<1x128xf32>
    tpu.vector_store %arg12[%c4_365, %c0_366], %360 {strides = array<i32>} : memref<5x128xf32, #tpu.memory_space<vmem>>, vector<1x128xf32>,
    %c0_367 = arith.constant 0 : index
    %c0_368 = arith.constant 0 : index
    %362 = vector.load %arg12[%c0_367, %c0_368] : memref<5x128xf32, #tpu.memory_space<vmem>>, vector<5x128xf32>
    %c0_369 = arith.constant 0 : index
    %c0_370 = arith.constant 0 : index
    %363 = vector.load %arg8[%c0_369, %c0_370] : memref<128x2xf32, #tpu.memory_space<vmem>>, vector<128x2xf32>
    %cst_371 = arith.constant dense<0.000000e+00> : vector<5x2xf32>
    %364 = tpu.matmul %362, %363, %cst_371 {dimension_numbers = #tpu.dot_dimension_numbers<[1], [0], [0], [1], [0, 0, 1, 1], [], []>} : vector<5x128xf32>, vector<128x2xf32>, vector<5x2xf32> -> vector<5x2xf32>
    %c0_372 = arith.constant 0 : index
    %c0_373 = arith.constant 0 : index
    %365 = vector.load %arg7[%c0_372, %c0_373] : memref<5x1xf32, #tpu.memory_space<vmem>>, vector<5x1xf32>
    %366 = vector.broadcast %365 : vector<5x1xf32> to vector<5x2xf32>
    %367 = arith.addf %364, %366 : vector<5x2xf32>
    %c0_374 = arith.constant 0 : index
    %c0_375 = arith.constant 0 : index
    %368 = vector.load %arg9[%c0_374, %c0_375] : memref<5x2xf32, #tpu.memory_space<vmem>>, vector<5x2xf32>
    tpu.vector_store %arg9[%c0_374, %c0_375], %367 {strides = array<i32>} : memref<5x2xf32, #tpu.memory_space<vmem>>, vector<5x2xf32>,
    return
  }
  func.func @transform_0(%arg0: i32) -> (i32, i32) {
    %c0_i32 = arith.constant 0 : i32
    %c0_i32_0 = arith.constant 0 : i32
    %c0_i32_1 = arith.constant 0 : i32
    return %c0_i32, %c0_i32_0 : i32, i32
  }
  func.func @transform_1(%arg0: i32) -> (i32, i32) {
    %c0_i32 = arith.constant 0 : i32
    %c0_i32_0 = arith.constant 0 : i32
    %c0_i32_1 = arith.constant 0 : i32
    return %c0_i32, %c0_i32_0 : i32, i32
  }
  func.func @transform_2(%arg0: i32) -> (i32, i32) {
    %c0_i32 = arith.constant 0 : i32
    %c0_i32_0 = arith.constant 0 : i32
    %c0_i32_1 = arith.constant 0 : i32
    return %c0_i32, %c0_i32_0 : i32, i32
  }
  func.func @transform_3(%arg0: i32) -> (i32, i32, i32) {
    %c0_i32 = arith.constant 0 : i32
    %c0_i32_0 = arith.constant 0 : i32
    %c0_i32_1 = arith.constant 0 : i32
    %c0_i32_2 = arith.constant 0 : i32
    return %c0_i32, %c0_i32_0, %c0_i32_1 : i32, i32, i32
  }
  func.func @transform_4(%arg0: i32) -> (i32, i32, i32) {
    %c0_i32 = arith.constant 0 : i32
    %c0_i32_0 = arith.constant 0 : i32
    %c0_i32_1 = arith.constant 0 : i32
    %c0_i32_2 = arith.constant 0 : i32
    return %c0_i32, %c0_i32_0, %c0_i32_1 : i32, i32, i32
  }
  func.func @transform_5(%arg0: i32) -> (i32, i32, i32) {
    %c0_i32 = arith.constant 0 : i32
    %c0_i32_0 = arith.constant 0 : i32
    %c0_i32_1 = arith.constant 0 : i32
    %c0_i32_2 = arith.constant 0 : i32
    return %c0_i32, %c0_i32_0, %c0_i32_1 : i32, i32, i32
  }
  func.func @transform_6(%arg0: i32) -> (i32, i32) {
    %c0_i32 = arith.constant 0 : i32
    %c0_i32_0 = arith.constant 0 : i32
    %c0_i32_1 = arith.constant 0 : i32
    return %c0_i32, %c0_i32_0 : i32, i32
  }
  func.func @transform_7(%arg0: i32) -> (i32, i32) {
    %c0_i32 = arith.constant 0 : i32
    %c0_i32_0 = arith.constant 0 : i32
    %c0_i32_1 = arith.constant 0 : i32
    return %c0_i32, %c0_i32_0 : i32, i32
  }
  func.func @transform_8(%arg0: i32) -> (i32, i32) {
    %c0_i32 = arith.constant 0 : i32
    %c0_i32_0 = arith.constant 0 : i32
    %c0_i32_1 = arith.constant 0 : i32
    return %c0_i32, %c0_i32_0 : i32, i32
  }
}

</mosaic_0001>

<bundles_post_ra>
// kernel: tile.9
= control target key start
LH: loop header
LB: loop body
LE: loop exit
PB: predicated region body
PF: predicated region fallthrough
CT: control target
= control target key end

     0   :  { %vm203_vm0 = vcmask 1047556   ;;  %s383_s10 = smov 64   ;;  %vm205_vm1 = vcmask 523264   ;;  %vm251_vm2 = vcmask 1048064   ;;  %s564_s0 = inlined_call_operand.vmem [shape: f32[5,8,2,64], index: 0, kind: input, shape index: {}]   ;;  %s565_s1 = inlined_call_operand.vmem [shape: f32[5,8,128], index: 1, kind: output, shape index: {}]  }
   0x1   :  { %v367_v0 = vld [vmem:[%s564_s0 + $0xe] sm:$0x3]  ;;  %v368_v1 = vld [vmem:[%s564_s0 + $0xc] sm:$0x3]  ;;  %v369_v2 = vld [vmem:[%s564_s0 + $0xa] sm:$0x3] }
   0x2   :  { %169 = vst [vmem:[#allocation0 + $0x38] sm:$0x3] %v367_v0  ;;  %174 = vst [vmem:[#allocation0 + $0x30] sm:$0x3] %v368_v1  ;;  %v370_v3 = vld [vmem:[%s564_s0 + $0x8] sm:$0x3] }
   0x3   :  { %179 = vst [vmem:[#allocation0 + $0x28] sm:$0x3] %v369_v2  ;;  %v371_v4 = vld [vmem:[%s564_s0 + $0x6] sm:$0x3]  ;;  %v372_v5 = vld [vmem:[%s564_s0 + $0x4] sm:$0x3] }
   0x4   :  { %184 = vst [vmem:[#allocation0 + $0x20] sm:$0x3] %v370_v3  ;;  %189 = vst [vmem:[#allocation0 + $0x18] sm:$0x3] %v371_v4  ;;  %v373_v6 = vld [vmem:[%s564_s0 + $0x2] sm:$0x3] }
   0x5   :  { %194 = vst [vmem:[#allocation0 + $0x10] sm:$0x3] %v372_v5  ;;  %v199_v7 = vld [vmem:[%s564_s0] sm:$0x3]  ;;  %198 = vst [vmem:[#allocation0 + $0x8] sm:$0x3] %v373_v6 }
   0x6   :  { %200 = vst [vmem:[#allocation0] sm:$0x3] %v199_v7  ;;  %v359_v8 = vld [vmem:[%s564_s0 + $0x1e] sm:$0x3]  ;;  %v360_v9 = vld [vmem:[%s564_s0 + $0x1c] sm:$0x3] }
   0x7   :  { %v361_v10 = vld [vmem:[%s564_s0 + $0x1a] sm:$0x3]  ;;  %129 = vst [vmem:[#allocation0 + $0x78] sm:$0x3] %v359_v8  ;;  %134 = vst [vmem:[#allocation0 + $0x70] sm:$0x3] %v360_v9 }
   0x8   :  { %139 = vst [vmem:[#allocation0 + $0x68] sm:$0x3] %v361_v10  ;;  %v362_v11 = vld [vmem:[%s564_s0 + $0x18] sm:$0x3]  ;;  %v363_v12 = vld [vmem:[%s564_s0 + $0x16] sm:$0x3] }
   0x9   :  { %v364_v13 = vld [vmem:[%s564_s0 + $0x14] sm:$0x3]  ;;  %144 = vst [vmem:[#allocation0 + $0x60] sm:$0x3] %v362_v11  ;;  %149 = vst [vmem:[#allocation0 + $0x58] sm:$0x3] %v363_v12 }
   0xa   :  { %154 = vst [vmem:[#allocation0 + $0x50] sm:$0x3] %v364_v13  ;;  %v365_v14 = vld [vmem:[%s564_s0 + $0x12] sm:$0x3]  ;;  %v366_v15 = vld [vmem:[%s564_s0 + $0x10] sm:$0x3] }
   0xb   :  { %v335_v16 = vld [vmem:[%s564_s0 + $0x4e] sm:$0x3]  ;;  %159 = vst [vmem:[#allocation0 + $0x48] sm:$0x3] %v365_v14  ;;  %164 = vst [vmem:[#allocation0 + $0x40] sm:$0x3] %v366_v15 }
   0xc   :  { %9 = vst [vmem:[#allocation0 + $0x138] sm:$0x3] %v335_v16  ;;  %v336_v17 = vld [vmem:[%s564_s0 + $0x4c] sm:$0x3]  ;;  %v337_v18 = vld [vmem:[%s564_s0 + $0x4a] sm:$0x3] }
   0xd   :  { %v338_v19 = vld [vmem:[%s564_s0 + $0x48] sm:$0x3]  ;;  %14 = vst [vmem:[#allocation0 + $0x130] sm:$0x3] %v336_v17  ;;  %19 = vst [vmem:[#allocation0 + $0x128] sm:$0x3] %v337_v18 }
   0xe   :  { %24 = vst [vmem:[#allocation0 + $0x120] sm:$0x3] %v338_v19  ;;  %v339_v20 = vld [vmem:[%s564_s0 + $0x46] sm:$0x3]  ;;  %v340_v21 = vld [vmem:[%s564_s0 + $0x44] sm:$0x3] }
   0xf   :  { %v341_v22 = vld [vmem:[%s564_s0 + $0x42] sm:$0x3]  ;;  %29 = vst [vmem:[#allocation0 + $0x118] sm:$0x3] %v339_v20  ;;  %34 = vst [vmem:[#allocation0 + $0x110] sm:$0x3] %v340_v21 }
  0x10   :  { %39 = vst [vmem:[#allocation0 + $0x108] sm:$0x3] %v341_v22  ;;  %v342_v23 = vld [vmem:[%s564_s0 + $0x40] sm:$0x3]  ;;  %v351_v24 = vld [vmem:[%s564_s0 + $0x2e] sm:$0x3] }
  0x11   :  { %v352_v25 = vld [vmem:[%s564_s0 + $0x2c] sm:$0x3]  ;;  %v246_v26 = vld [vmem:[#allocation0 + $0x1] ss:$8 sm:$0xf0]  }
  0x12   :  { %44 = vst [vmem:[#allocation0 + $0x100] sm:$0x3] %v342_v23  ;;  %89 = vst [vmem:[#allocation0 + $0xb8] sm:$0x3] %v351_v24  ;;  %v353_v27 = vld [vmem:[%s564_s0 + $0x2a] sm:$0x3] }
  0x13   :  { %94 = vst [vmem:[#allocation0 + $0xb0] sm:$0x3] %v352_v25  ;;  %v244_v28 = vld [vmem:[#allocation0 + $0x1] ss:$8 sm:$0xf]  }
  0x14   :  { %99 = vst [vmem:[#allocation0 + $0xa8] sm:$0x3] %v353_v27  ;;  %v354_v29 = vld [vmem:[%s564_s0 + $0x28] sm:$0x3]  ;;  %v248_v30 = vsel %vm203_vm0, %v246_v26, %v244_v28  ;;  %v355_v31 = vld [vmem:[%s564_s0 + $0x26] sm:$0x3] }
  0x15   :  { %104 = vst [vmem:[#allocation0 + $0xa0] sm:$0x3] %v354_v29  ;;  %v356_v32 = vld [vmem:[%s564_s0 + $0x24] sm:$0x3]  ;;  %v357_v33 = vld [vmem:[%s564_s0 + $0x22] sm:$0x3]  ;;  %249 = vrot.lane.b32.xlu0 %v248_v30, %s383_s10 }
  0x16   :  { %v267_v34 = vld [vmem:[#allocation0 + $0x41] ss:$8 sm:$0xf0]   ;;  %109 = vst [vmem:[#allocation0 + $0x98] sm:$0x3] %v355_v31 }
  0x17   :  { %114 = vst [vmem:[#allocation0 + $0x90] sm:$0x3] %v356_v32  ;;  %119 = vst [vmem:[#allocation0 + $0x88] sm:$0x3] %v357_v33  ;;  %v358_v35 = vld [vmem:[%s564_s0 + $0x20] sm:$0x3] }
  0x18   :  { %v265_v36 = vld [vmem:[#allocation0 + $0x41] ss:$8 sm:$0xf]   ;;  %124 = vst [vmem:[#allocation0 + $0x80] sm:$0x3] %v358_v35 }
  0x19   :  { %v343_v37 = vld [vmem:[%s564_s0 + $0x3e] sm:$0x3]  ;;  %v269_v38 = vsel %vm203_vm0, %v267_v34, %v265_v36  ;;  %v256_v39 = vld [vmem:[#allocation0 + $0x101] ss:$8 sm:$0xf0]  }
  0x1a   :  { %49 = vst [vmem:[#allocation0 + $0xf8] sm:$0x3] %v343_v37  ;;  %v344_v40 = vld [vmem:[%s564_s0 + $0x3c] sm:$0x3]  ;;  %270 = vrot.lane.b32.xlu1 %v269_v38, %s383_s10  ;;  %v345_v41 = vld [vmem:[%s564_s0 + $0x3a] sm:$0x3] }
  0x1b   :  { %54 = vst [vmem:[#allocation0 + $0xf0] sm:$0x3] %v344_v40  ;;  %v346_v42 = vld [vmem:[%s564_s0 + $0x38] sm:$0x3]  ;;  %v347_v43 = vld [vmem:[%s564_s0 + $0x36] sm:$0x3] }
  0x1c   :  { %v254_v44 = vld [vmem:[#allocation0 + $0x101] ss:$8 sm:$0xf]   ;;  %59 = vst [vmem:[#allocation0 + $0xe8] sm:$0x3] %v345_v41 }
  0x1d   :  { %64 = vst [vmem:[#allocation0 + $0xe0] sm:$0x3] %v346_v42  ;;  %69 = vst [vmem:[#allocation0 + $0xd8] sm:$0x3] %v347_v43  ;;  %v348_v45 = vld [vmem:[%s564_s0 + $0x34] sm:$0x3]  ;;  %v258_v46 = vsel %vm203_vm0, %v256_v39, %v254_v44 }
  0x1e   :  { %74 = vst [vmem:[#allocation0 + $0xd0] sm:$0x3] %v348_v45  ;;  %v349_v47 = vld [vmem:[%s564_s0 + $0x32] sm:$0x3]  ;;  %v350_v48 = vld [vmem:[%s564_s0 + $0x30] sm:$0x3]  ;;  %259 = vrot.lane.b32.xlu0 %v258_v46, %s383_s10 }
  0x1f   :  { %v278_v49 = vld [vmem:[#allocation0 + $0x81] ss:$8 sm:$0xf0]   ;;  %79 = vst [vmem:[#allocation0 + $0xc8] sm:$0x3] %v349_v47 }
  0x20   :  { %84 = vst [vmem:[#allocation0 + $0xc0] sm:$0x3] %v350_v48  ;;  %v201_v50 = vld [vmem:[#allocation0] ss:$8 sm:$0xf]  }
  0x21   :  { %v202_v51 = vld [vmem:[#allocation0] ss:$8 sm:$0xf0]   ;;  %v276_v53 = vld [vmem:[#allocation0 + $0x81] ss:$8 sm:$0xf]  }
  0x22   :  { %v208_v52 = vld [vmem:[#allocation0 + $0x40] ss:$8 sm:$0xf]   ;;  %v204_v54 = vsel %vm203_vm0, %v202_v51, %v201_v50  ;;  %v280_v56 = vsel %vm203_vm0, %v278_v49, %v276_v53 }
  0x23   :  { %v210_v55 = vld [vmem:[#allocation0 + $0x40] ss:$8 sm:$0xf0]   ;;  %206 = vst.msk [vmem:[%s565_s1] sm:$0xff] %vm205_vm1, %v204_v54   ;;  %281 = vrot.lane.b32.xlu1 %v280_v56, %s383_s10 }
  0x24   :  { %v212_v57 = vsel %vm203_vm0, %v210_v55, %v208_v52  ;;  %v235_v58 = vld [vmem:[#allocation0 + $0x100] ss:$8 sm:$0xf]   ;;  %v289_v63 = vld [vmem:[#allocation0 + $0xc1] ss:$8 sm:$0xf0]  }
  0x25   :  { %v237_v59 = vld [vmem:[#allocation0 + $0x100] ss:$8 sm:$0xf0]   ;;  %374 = vst.msk [vmem:[%s565_s1 + $0x8] sm:$0xff] %vm205_vm1, %v212_v57  }
  0x26   :  { %v239_v60 = vsel %vm203_vm0, %v237_v59, %v235_v58  ;;  %v217_v61 = vld [vmem:[#allocation0 + $0x80] ss:$8 sm:$0xf]  }
  0x27   :  { %v219_v62 = vld [vmem:[#allocation0 + $0x80] ss:$8 sm:$0xf0]   ;;  %377 = vst.msk [vmem:[%s565_s1 + $0x20] sm:$0xff] %vm205_vm1, %v239_v60  }
  0x28   :  { %v221_v0 = vsel %vm203_vm0, %v219_v62, %v217_v61  ;;  %v228_v1 = vld [vmem:[#allocation0 + $0xc0] ss:$8 sm:$0xf0]   ;;  %v287_v2 = vld [vmem:[#allocation0 + $0xc1] ss:$8 sm:$0xf]  }
  0x29   :  { %375 = vst.msk [vmem:[%s565_s1 + $0x10] sm:$0xff] %vm205_vm1, %v221_v0   ;;  %v226_v3 = vld [vmem:[#allocation0 + $0xc0] ss:$8 sm:$0xf]   ;;  %v291_v4 = vsel %vm203_vm0, %v289_v63, %v287_v2 }
  0x2a   :  { %v230_v5 = vsel %vm203_vm0, %v228_v1, %v226_v3  ;;  %292 = vrot.lane.b32.xlu0 %v291_v4, %s383_s10 }
  0x2b   :  { %376 = vst.msk [vmem:[%s565_s1 + $0x18] sm:$0xff] %vm205_vm1, %v230_v5  }
  0x87   :  { %v250_v6 = vpop.permute.xlu0 %249  }
  0x88   :  { %252 = vst.msk [vmem:[%s565_s1] sm:$0xff] %vm251_vm2, %v250_v6  }
  0x8c   :  { %v271_v7 = vpop.permute.xlu1 %270  }
  0x8d   :  { %379 = vst.msk [vmem:[%s565_s1 + $0x8] sm:$0xff] %vm251_vm2, %v271_v7  }
  0x90   :  { %v260_v8 = vpop.permute.xlu0 %259  }
  0x91   :  { %378 = vst.msk [vmem:[%s565_s1 + $0x20] sm:$0xff] %vm251_vm2, %v260_v8  }
  0x95   :  { %v282_v9 = vpop.permute.xlu1 %281  }
  0x96   :  { %380 = vst.msk [vmem:[%s565_s1 + $0x10] sm:$0xff] %vm251_vm2, %v282_v9  }
  0x9c   :  { %v293_v10 = vpop.permute.xlu0 %292  }
  0x9d   :  { %381 = vst.msk [vmem:[%s565_s1 + $0x18] sm:$0xff] %vm251_vm2, %v293_v10  }

// kernel: actor_critic_forward.1
= control target key start
LH: loop header
LB: loop body
LE: loop exit
PB: predicated region body
PF: predicated region fallthrough
CT: control target
= control target key end

     0   :  { %v963_v1 = vmov 0.0   ;;  %s1575_s29 = smov 120   ;;  %s1581_s30 = smov 110   ;;  %vm986_vm0 = vmmov 0   ;;  %v987_v4 = vmov 0   ;;  %vm168_vm1 = vcmask 261120   ;;  %s1560_s0 = inlined_call_operand.vmem [shape: f32[1,128], index: 0, kind: input, shape index: {}]   ;;  %s1561_s1 = inlined_call_operand.vmem [shape: f32[200,128], index: 1, kind: input, shape index: {}]   ;;  %s1562_s4 = inlined_call_operand.vmem [shape: f32[3,8,1], index: 4, kind: input, shape index: {}]   ;;  %s1563_s2 = inlined_call_operand.vmem [shape: f32[8,32], index: 2, kind: input, shape index: {}]   ;;  %s1564_s3 = inlined_call_operand.vmem [shape: f32[2,8,200], index: 3, kind: input, shape index: {}]   ;;  %s1565_s6 = inlined_call_operand.vmem [shape: f32[5,1], index: 6, kind: input, shape index: {}]   ;;  %s1566_s7 = inlined_call_operand.vmem [shape: f32[128,2], index: 7, kind: input, shape index: {}]   ;;  %s1567_s5 = inlined_call_operand.vmem [shape: f32[5,8,128], index: 5, kind: input, shape index: {}]   ;;  %s1568_s8 = inlined_call_operand.vmem [shape: f32[5,2], index: 8, kind: output, shape index: {}]  }
   0x1   :  { %v1038_v0 = vld [vmem:[%s1560_s0] sm:$0x1]  ;;  %31 = vst [vmem:[#allocation2 + $0x10] sm:$0xff] %v963_v1  ;;  %29 = vst [vmem:[#allocation2] sm:$0xff] %v963_v1  ;;  %888 = vmatprep.subr.mxu0 %v963_v1  ;;  %404 = vmatprep.subr.mxu1 %v963_v1  ;;  %s1571_s0 = smov 119   ;;  %s1569_s9 = smov 121  }
   0x2   :  { %30 = vst [vmem:[#allocation2 + $0x8] sm:$0xff] %v963_v1  ;;  %32 = vst [vmem:[#allocation2 + $0x18] sm:$0xff] %v963_v1  ;;  %117 = vrot.lane.b32.xlu1 %v1038_v0, %s1575_s29  ;;  %152 = vrot.lane.b32.xlu0 %v1038_v0, %s1581_s30  ;;  %s1573_s10 = smov 114   ;;  %s1579_s11 = smov 118   ;;  %v94_v2 = vld [vmem:[%s1561_s1 + $0x60] sm:$0x1] }
   0x3   :  { %s1577_s12 = smov 112   ;;  %s1583_s13 = smov 113   ;;  %v95_v3 = vmul.f32 %v94_v2, %v1038_v0  ;;  %896 = vmatprep.mubr.msk.f32.mxu0 %vm986_vm0, %v963_v1  ;;  %961 = vset.pattern.permute.xlu0 %v987_v4  ;;  %v162_v5 = vld [vmem:[%s1562_s4] sm:$0xff]  ;;  %v119_v6 = vld [vmem:[%s1561_s1 + $0x88] sm:$0x1]  ;;  %vm400_vm2 = vcmask 588800  }
   0x4   :  { %s972_s16 = smov 7   ;;  %s1587_s17 = smov 111   ;;  %962 = vset.pattern.permute.xlu1 %v987_v4  ;;  %v154_v7 = vld [vmem:[%s1561_s1 + $0xc0] sm:$0x1]  ;;  %v124_v12 = vld [vmem:[%s1561_s1 + $0x90] sm:$0x1] }
   0x5   :  { %96 = vst [vmem:[#allocation2 + $0xc] sm:$0x1] %v95_v3  ;;  %s974_s18 = smov 2   ;;  %s975_s19 = smov 6   ;;  %v114_v13 = vld [vmem:[%s1561_s1 + $0x80] sm:$0x1] }
   0x6   :  { %122 = vrot.lane.b32.xlu1 %v1038_v0, %s1571_s0  ;;  %112 = vrot.lane.b32.xlu0 %v1038_v0, %s1569_s9  ;;  %s976_s20 = smov 127   ;;  %s977_s21 = smov 1   ;;  %v134_v18 = vld [vmem:[%s1561_s1 + $0xa0] sm:$0x1]  ;;  %v129_v19 = vld [vmem:[%s1561_s1 + $0x98] sm:$0x1] }
   0x7   :  { %s978_s22 = smov 122   ;;  %s979_s23 = smov 126   ;;  %v144_v25 = vld [vmem:[%s1561_s1 + $0xb0] sm:$0x1]  ;;  %v139_v26 = vld [vmem:[%s1561_s1 + $0xa8] sm:$0x1] }
   0x8   :  { %s1585_s24 = smov 17   ;;  %s1589_s25 = smov 18   ;;  %v76_v31 = vld [vmem:[%s1561_s1 + $0x40] sm:$0x1]  ;;  %v149_v32 = vld [vmem:[%s1561_s1 + $0xb8] sm:$0x1] }
   0x9   :  { %s1592_s26 = smov 15   ;;  %s1590_s27 = smov 16   ;;  %v86_v37 = vld [vmem:[%s1561_s1 + $0x50] sm:$0x1]  ;;  %v81_v38 = vld [vmem:[%s1561_s1 + $0x48] sm:$0x1] }
   0xa   :  { %132 = vrot.lane.b32.xlu1 %v1038_v0, %s1573_s10  ;;  %127 = vrot.lane.b32.xlu0 %v1038_v0, %s1579_s11  ;;  %s1594_s28 = smov 10   ;;  %s1591_s14 = smov 14   ;;  %v99_v43 = vld [vmem:[%s1561_s1 + $0x68] sm:$0x1]  ;;  %v91_v44 = vld [vmem:[%s1561_s1 + $0x58] sm:$0x1] }
   0xb   :  { %s988_s15 = smov 8   ;;  %s1593_s9 = smov 9   ;;  %v109_v50 = vld [vmem:[%s1561_s1 + $0x78] sm:$0x1]  ;;  %v104_v51 = vld [vmem:[%s1561_s1 + $0x70] sm:$0x1] }
   0xc   :  { %v41_v56 = vld [vmem:[%s1561_s1 + $0x8] sm:$0x1]  ;;  %v36_v57 = vld [vmem:[%s1561_s1] sm:$0x1]  ;;  %v51_v62 = vld [vmem:[%s1561_s1 + $0x18] sm:$0x1] }
   0xd   :  { %v46_v63 = vld [vmem:[%s1561_s1 + $0x10] sm:$0x1]  ;;  %s1598_s0 = smov 110   ;;  %s1599_s29 = smov 118   ;;  %vm849_vm3 = vcmask 12288  }
   0xe   :  { %142 = vrot.lane.b32.xlu1 %v1038_v0, %s1577_s12  ;;  %137 = vrot.lane.b32.xlu0 %v1038_v0, %s1583_s13  ;;  %s1600_s30 = smov 112   ;;  %s1601_s12 = smov 120  }
   0xf   :  { %s1602_s13 = smov 114  }
  0x12   :  { %74 = vrot.lane.b32.xlu1 %v1038_v0, %s972_s16  ;;  %147 = vrot.lane.b32.xlu0 %v1038_v0, %s1587_s17  ;;  %s1596_s17 = smov 17  }
  0x16   :  { %84 = vrot.lane.b32.xlu1 %v1038_v0, %s974_s18  ;;  %79 = vrot.lane.b32.xlu0 %v1038_v0, %s975_s19 }
  0x1a   :  { %97 = vrot.lane.b32.xlu1 %v1038_v0, %s976_s20  ;;  %89 = vrot.lane.b32.xlu0 %v1038_v0, %s977_s21 }
  0x1e   :  { %107 = vrot.lane.b32.xlu1 %v1038_v0, %s978_s22  ;;  %102 = vrot.lane.b32.xlu0 %v1038_v0, %s979_s23 }
  0x22   :  { %39 = vrot.lane.b32.xlu1 %v1038_v0, %s1585_s24  ;;  %34 = vrot.lane.b32.xlu0 %v1038_v0, %s1589_s25  ;;  %s1597_s24 = smov 113  }
  0x26   :  { %49 = vrot.lane.b32.xlu1 %v1038_v0, %s1592_s26  ;;  %44 = vrot.lane.b32.xlu0 %v1038_v0, %s1590_s27 }
  0x2a   :  { %59 = vrot.lane.b32.xlu1 %v1038_v0, %s1594_s28  ;;  %54 = vrot.lane.b32.xlu0 %v1038_v0, %s1591_s14 }
  0x2e   :  { %69 = vrot.lane.b32.xlu1 %v1038_v0, %s988_s15  ;;  %64 = vrot.lane.b32.xlu0 %v1038_v0, %s1593_s9 }
  0x32   :  { %165 = vperm.xlu0 %961, %v162_v5  }
  0x74   :  { %v118_v8 = vpop.permute.xlu1 %117  ;;  %v153_v9 = vpop.permute.xlu0 %152 }
  0x75   :  { %v120_v10 = vmul.f32 %v119_v6, %v118_v8  ;;  %v155_v11 = vmul.f32 %v154_v7, %v153_v9  ;;  %v61_v6 = vld [vmem:[%s1561_s1 + $0x28] sm:$0x1]  ;;  %v56_v7 = vld [vmem:[%s1561_s1 + $0x20] sm:$0x1] }
  0x77   :  { %121 = vst [vmem:[#allocation2 + $0x11] sm:$0x1] %v120_v10  ;;  %156 = vst [vmem:[#allocation2 + $0x18] sm:$0x1] %v155_v11 }
  0x78   :  { %v123_v14 = vpop.permute.xlu1 %122  ;;  %v113_v15 = vpop.permute.xlu0 %112 }
  0x79   :  { %v125_v16 = vmul.f32 %v124_v12, %v123_v14  ;;  %v115_v17 = vmul.f32 %v114_v13, %v113_v15  ;;  %v71_v12 = vld [vmem:[%s1561_s1 + $0x38] sm:$0x1]  ;;  %v66_v13 = vld [vmem:[%s1561_s1 + $0x30] sm:$0x1] }
  0x7b   :  { %126 = vst [vmem:[#allocation2 + $0x12] sm:$0x1] %v125_v16  ;;  %116 = vst [vmem:[#allocation2 + $0x10] sm:$0x1] %v115_v17 }
  0x7c   :  { %v133_v20 = vpop.permute.xlu1 %132  ;;  %v128_v21 = vpop.permute.xlu0 %127 }
  0x7d   :  { %v135_v22 = vmul.f32 %v134_v18, %v133_v20  ;;  %v130_v23 = vmul.f32 %v129_v19, %v128_v21  ;;  %v157_v18 = vld [vmem:[%s1563_s2] sm:$0xff]  ;;  %s1595_s2 = smov 111  }
  0x7e   :  { %v161_v24 = vld [vmem:[#allocation2 + $0x18] sm:$0xff] }
  0x7f   :  { %136 = vst [vmem:[#allocation2 + $0x14] sm:$0x1] %v135_v22  ;;  %131 = vst [vmem:[#allocation2 + $0x13] sm:$0x1] %v130_v23  ;;  %889 = vmatpush3.msra.mxu0 %v161_v24 }
  0x80   :  { %v143_v27 = vpop.permute.xlu1 %142  ;;  %v138_v28 = vpop.permute.xlu0 %137  ;;  %890 = vmatprep.subr.mxu0 %v963_v1 }
  0x81   :  { %v145_v29 = vmul.f32 %v144_v25, %v143_v27  ;;  %v140_v30 = vmul.f32 %v139_v26, %v138_v28  ;;  %v367_v25 = vld [vmem:[%s1564_s3 + $0x8] sm:$0xff]  ;;  %v1216_v27 = vld [vmem:[%s1561_s1 + $0x78] sm:$0xff] }
  0x82   :  { %857 = vmatprep.mubr.msk.f32.mxu1 %vm400_vm2, %v367_v25  ;;  %v856_v26 = vld [vmem:[%s1562_s4 + $0x8] sm:$0xff] }
  0x83   :  { %146 = vst [vmem:[#allocation2 + $0x16] sm:$0x1] %v145_v29  ;;  %141 = vst [vmem:[#allocation2 + $0x15] sm:$0x1] %v140_v30 }
  0x84   :  { %v75_v33 = vpop.permute.xlu1 %74  ;;  %v148_v34 = vpop.permute.xlu0 %147 }
  0x85   :  { %v77_v35 = vmul.f32 %v76_v31, %v75_v33  ;;  %v150_v36 = vmul.f32 %v149_v32, %v148_v34  ;;  %v1222_v31 = vld [vmem:[%s1561_s1 + $0x70] sm:$0xff]  ;;  %v1227_v32 = vld [vmem:[%s1561_s1 + $0x68] sm:$0xff] }
  0x87   :  { %78 = vst [vmem:[#allocation2 + $0x8] sm:$0x1] %v77_v35  ;;  %151 = vst [vmem:[#allocation2 + $0x17] sm:$0x1] %v150_v36  ;;  %v1234_v36 = vld [vmem:[%s1561_s1 + $0x60] sm:$0xff] }
  0x88   :  { %v85_v39 = vpop.permute.xlu1 %84  ;;  %v80_v40 = vpop.permute.xlu0 %79 }
  0x89   :  { %v87_v41 = vmul.f32 %v86_v37, %v85_v39  ;;  %v82_v42 = vmul.f32 %v81_v38, %v80_v40  ;;  %v1241_v39 = vld [vmem:[%s1561_s1 + $0x58] sm:$0xff] }
  0x8b   :  { %88 = vst [vmem:[#allocation2 + $0xa] sm:$0x1] %v87_v41  ;;  %83 = vst [vmem:[#allocation2 + $0x9] sm:$0x1] %v82_v42  ;;  %v1247_v42 = vld [vmem:[%s1561_s1 + $0x50] sm:$0xff] }
  0x8c   :  { %v98_v45 = vpop.permute.xlu1 %97  ;;  %v90_v46 = vpop.permute.xlu0 %89 }
  0x8d   :  { %v100_v47 = vmul.f32 %v99_v43, %v98_v45  ;;  %v92_v48 = vmul.f32 %v91_v44, %v90_v46  ;;  %v1254_v45 = vld [vmem:[%s1561_s1 + $0x48] sm:$0xff] }
  0x8e   :  { %v160_v49 = vld [vmem:[#allocation2 + $0x10] sm:$0xff] }
  0x8f   :  { %101 = vst [vmem:[#allocation2 + $0xd] sm:$0x1] %v100_v47  ;;  %93 = vst [vmem:[#allocation2 + $0xb] sm:$0x1] %v92_v48  ;;  %891 = vmatpush3.msra.mxu0 %v160_v49  ;;  %v1261_v48 = vld [vmem:[%s1561_s1 + $0x40] sm:$0xff] }
  0x90   :  { %v108_v52 = vpop.permute.xlu1 %107  ;;  %v103_v53 = vpop.permute.xlu0 %102  ;;  %892 = vmatprep.subr.mxu0 %v963_v1 }
  0x91   :  { %v110_v54 = vmul.f32 %v109_v50, %v108_v52  ;;  %v105_v55 = vmul.f32 %v104_v51, %v103_v53  ;;  %v1268_v51 = vld [vmem:[%s1561_s1 + $0x38] sm:$0xff] }
  0x93   :  { %111 = vst [vmem:[#allocation2 + $0xf] sm:$0x1] %v110_v54  ;;  %106 = vst [vmem:[#allocation2 + $0xe] sm:$0x1] %v105_v55  ;;  %v1275_v54 = vld [vmem:[%s1561_s1 + $0x30] sm:$0xff] }
  0x94   :  { %v40_v58 = vpop.permute.xlu1 %39  ;;  %v35_v59 = vpop.permute.xlu0 %34 }
  0x95   :  { %v42_v60 = vmul.f32 %v41_v56, %v40_v58  ;;  %v37_v61 = vmul.f32 %v36_v57, %v35_v59  ;;  %v1282_v57 = vld [vmem:[%s1561_s1 + $0x28] sm:$0xff] }
  0x97   :  { %43 = vst [vmem:[#allocation2 + $0x1] sm:$0x1] %v42_v60  ;;  %38 = vst [vmem:[#allocation2] sm:$0x1] %v37_v61  ;;  %v1289_v60 = vld [vmem:[%s1561_s1 + $0x20] sm:$0xff] }
  0x98   :  { %v50_v0 = vpop.permute.xlu1 %49  ;;  %v45_v2 = vpop.permute.xlu0 %44 }
  0x99   :  { %v52_v3 = vmul.f32 %v51_v62, %v50_v0  ;;  %v47_v4 = vmul.f32 %v46_v63, %v45_v2  ;;  %v1296_v63 = vld [vmem:[%s1561_s1 + $0x18] sm:$0xff] }
  0x9a   :  { %v159_v5 = vld [vmem:[#allocation2 + $0x8] sm:$0xff] }
  0x9b   :  { %53 = vst [vmem:[#allocation2 + $0x3] sm:$0x1] %v52_v3  ;;  %48 = vst [vmem:[#allocation2 + $0x2] sm:$0x1] %v47_v4  ;;  %893 = vmatpush3.msra.mxu0 %v159_v5  ;;  %v1303_v3 = vld [vmem:[%s1561_s1 + $0x10] sm:$0xff] }
  0x9c   :  { %v60_v8 = vpop.permute.xlu1 %59  ;;  %v55_v9 = vpop.permute.xlu0 %54  ;;  %894 = vmatprep.subr.mxu0 %v963_v1 }
  0x9d   :  { %v62_v10 = vmul.f32 %v61_v6, %v60_v8  ;;  %v57_v11 = vmul.f32 %v56_v7, %v55_v9  ;;  %v1310_v6 = vld [vmem:[%s1561_s1 + $0x8] sm:$0xff]  ;;  %v1317_v9 = vld [vmem:[%s1561_s1] sm:$0xff] }
  0x9f   :  { %63 = vst [vmem:[#allocation2 + $0x5] sm:$0x1] %v62_v10  ;;  %58 = vst [vmem:[#allocation2 + $0x4] sm:$0x1] %v57_v11  ;;  %v1324_v11 = vld [vmem:[%s1561_s1 + $0xc0] sm:$0xff] }
  0xa0   :  { %v70_v14 = vpop.permute.xlu1 %69  ;;  %v65_v15 = vpop.permute.xlu0 %64 }
  0xa1   :  { %v72_v16 = vmul.f32 %v71_v12, %v70_v14  ;;  %v67_v17 = vmul.f32 %v66_v13, %v65_v15  ;;  %v1331_v14 = vld [vmem:[%s1561_s1 + $0xb8] sm:$0xff] }
  0xa3   :  { %73 = vst [vmem:[#allocation2 + $0x7] sm:$0x1] %v72_v16  ;;  %68 = vst [vmem:[#allocation2 + $0x6] sm:$0x1] %v67_v17  ;;  %v1338_v17 = vld [vmem:[%s1561_s1 + $0xb0] sm:$0xff] }
  0xaa   :  { %v158_v19 = vld [vmem:[#allocation2] sm:$0xff] }
  0xab   :  { %895 = vmatpush3.msra.mxu0 %v158_v19 }
  0xac   :  { %897 = vmatmul.mubr.msk.f32.vlgmr.msra.gmra.mxu0 %vm168_vm1, %v157_v18  ;;  %636 = vmatprep.subr.mxu0 %v963_v1 }
  0xad   :  { %v166_v20 = vpop.permute.xlu0 %165 }
 0x16c   :  { %v238_v21 = vpop.f32.mrf.mxu0 }
 0x16d   :  { %v239_v22 = vadd.f32 %v238_v21, %v166_v20  ;;  %v1345_v20 = vld [vmem:[%s1561_s1 + $0xa8] sm:$0xff] }
 0x16e   :  { %v898_v23 = vpop.f32.mrf.mxu0 }
 0x16f   :  { %v242_v24 = vmax.f32 %v239_v22, 0.0  ;;  %v1352_v23 = vld [vmem:[%s1561_s1 + $0xa0] sm:$0xff] }
 0x171   :  { %306 = vrot.lane.b32.xlu0 %v242_v24, %s976_s20  ;;  %316 = vrot.lane.b32.xlu1 %v242_v24, %s978_s22  ;;  %v304_v41 = vmul.f32 %v1234_v36, %v242_v24 }
 0x175   :  { %293 = vrot.lane.b32.xlu0 %v242_v24, %s974_s18  ;;  %311 = vrot.lane.b32.xlu1 %v242_v24, %s979_s23 }
 0x179   :  { %283 = vrot.lane.b32.xlu0 %v242_v24, %s972_s16  ;;  %298 = vrot.lane.b32.xlu1 %v242_v24, %s977_s21 }
 0x17d   :  { %273 = vrot.lane.b32.xlu0 %v242_v24, %s1593_s9  ;;  %288 = vrot.lane.b32.xlu1 %v242_v24, %s975_s19 }
 0x181   :  { %263 = vrot.lane.b32.xlu0 %v242_v24, %s1591_s14  ;;  %278 = vrot.lane.b32.xlu1 %v242_v24, %s988_s15  ;;  %s1603_s14 = smov 119  }
 0x185   :  { %253 = vrot.lane.b32.xlu0 %v242_v24, %s1590_s27  ;;  %268 = vrot.lane.b32.xlu1 %v242_v24, %s1594_s28  ;;  %s1607_s27 = smov 15  }
 0x189   :  { %243 = vrot.lane.b32.xlu0 %v242_v24, %s1589_s25  ;;  %258 = vrot.lane.b32.xlu1 %v242_v24, %s1592_s26  ;;  %s1604_s26 = smov 121   ;;  %s1606_s25 = smov 9  }
 0x18d   :  { %356 = vrot.lane.b32.xlu0 %v242_v24, %s1595_s2  ;;  %248 = vrot.lane.b32.xlu1 %v242_v24, %s1596_s17 }
 0x191   :  { %346 = vrot.lane.b32.xlu0 %v242_v24, %s1597_s24  ;;  %361 = vrot.lane.b32.xlu1 %v242_v24, %s1598_s0 }
 0x195   :  { %336 = vrot.lane.b32.xlu0 %v242_v24, %s1599_s29  ;;  %351 = vrot.lane.b32.xlu1 %v242_v24, %s1600_s30 }
 0x199   :  { %326 = vrot.lane.b32.xlu0 %v242_v24, %s1601_s12  ;;  %341 = vrot.lane.b32.xlu1 %v242_v24, %s1602_s13 }
 0x19d   :  { %397 = vperm.xlu0 %961, %v856_v26   ;;  %331 = vrot.lane.b32.xlu1 %v242_v24, %s1603_s14  ;;  %v1359_v26 = vld [vmem:[%s1561_s1 + $0x98] sm:$0xff] }
 0x1a1   :  { %321 = vrot.lane.b32.xlu1 %v242_v24, %s1604_s26 }
 0x1e3   :  { %v307_v28 = vpop.permute.xlu0 %306  ;;  %v317_v29 = vpop.permute.xlu1 %316 }
 0x1e4   :  { %v319_v30 = vmul.f32 %v1216_v27, %v317_v29  ;;  %v309_v37 = vmul.f32 %v1227_v32, %v307_v28  ;;  %v1366_v29 = vld [vmem:[%s1561_s1 + $0x90] sm:$0xff] }
 0x1e6   :  { %405 = vmatpush1.msra.mxu1 %v319_v30 }
 0x1e7   :  { %v294_v33 = vpop.permute.xlu0 %293  ;;  %v312_v34 = vpop.permute.xlu1 %311  ;;  %406 = vmatprep.subr.mxu1 %v963_v1 }
 0x1e8   :  { %v314_v35 = vmul.f32 %v1222_v31, %v312_v34  ;;  %v296_v47 = vmul.f32 %v1247_v42, %v294_v33  ;;  %v1373_v34 = vld [vmem:[%s1561_s1 + $0x88] sm:$0xff] }
 0x1ea   :  { %407 = vmatpush1.msra.mxu1 %v314_v35 }
 0x1eb   :  { %v284_v38 = vpop.permute.xlu0 %283  ;;  %408 = vmatprep.subr.mxu1 %v963_v1  ;;  %v299_v40 = vpop.permute.xlu1 %298 }
 0x1ec   :  { %409 = vmatpush1.msra.mxu1 %v309_v37  ;;  %v301_v43 = vmul.f32 %v1241_v39, %v299_v40  ;;  %v286_v53 = vmul.f32 %v1261_v48, %v284_v38  ;;  %v1380_v38 = vld [vmem:[%s1561_s1 + $0x80] sm:$0xff]  ;;  %s1605_s1 = smov 10  }
 0x1ed   :  { %410 = vmatprep.subr.mxu1 %v963_v1 }
 0x1ee   :  { %411 = vmatpush1.msra.mxu1 %v304_v41 }
 0x1ef   :  { %v274_v44 = vpop.permute.xlu0 %273  ;;  %v289_v46 = vpop.permute.xlu1 %288  ;;  %412 = vmatprep.subr.mxu1 %v963_v1 }
 0x1f0   :  { %413 = vmatpush1.msra.mxu1 %v301_v43  ;;  %v291_v49 = vmul.f32 %v1254_v45, %v289_v46  ;;  %v276_v59 = vmul.f32 %v1275_v54, %v274_v44  ;;  %v366_v44 = vld [vmem:[%s1564_s3] sm:$0xff] }
 0x1f1   :  { %414 = vmatprep.subr.mxu1 %v963_v1 }
 0x1f2   :  { %415 = vmatpush1.msra.mxu1 %v296_v47 }
 0x1f3   :  { %v264_v50 = vpop.permute.xlu0 %263  ;;  %v279_v52 = vpop.permute.xlu1 %278  ;;  %416 = vmatprep.subr.mxu1 %v963_v1 }
 0x1f4   :  { %417 = vmatpush1.msra.mxu1 %v291_v49  ;;  %v281_v55 = vmul.f32 %v1268_v51, %v279_v52  ;;  %v266_v2 = vmul.f32 %v1289_v60, %v264_v50 }
 0x1f5   :  { %418 = vmatprep.subr.mxu1 %v963_v1 }
 0x1f6   :  { %419 = vmatpush1.msra.mxu1 %v286_v53  ;;  %v859_v53 = vld [vmem:[%s1564_s3 + $0x18] sm:$0xff] }
 0x1f7   :  { %v254_v56 = vpop.permute.xlu0 %253  ;;  %v269_v58 = vpop.permute.xlu1 %268  ;;  %420 = vmatprep.subr.mxu1 %v963_v1  ;;  %861 = vmatprep.mubr.msk.f32.mxu0 %vm400_vm2, %v859_v53  ;;  %v762_v53 = vld [vmem:[%s1566_s7 + $0x28] sm:$0xff] }
 0x1f8   :  { %421 = vmatpush1.msra.mxu1 %v281_v55  ;;  %v271_v61 = vmul.f32 %v1282_v57, %v269_v58  ;;  %v256_v8 = vmul.f32 %v1303_v3, %v254_v56  ;;  %v772_v55 = vld [vmem:[%s1566_s7 + $0x78] sm:$0xff]  ;;  %v771_v56 = vld [vmem:[%s1566_s7 + $0x70] sm:$0xff]  ;;  %v773_v58 = vld [vmem:[%s1565_s6] sm:$0x1f] }
 0x1f9   :  { %422 = vmatprep.subr.mxu1 %v963_v1 }
 0x1fa   :  { %423 = vmatpush1.msra.mxu1 %v276_v59  ;;  %v860_v59 = vld [vmem:[%s1562_s4 + $0x10] sm:$0xff] }
 0x1fb   :  { %v244_v62 = vpop.permute.xlu0 %243  ;;  %v259_v0 = vpop.permute.xlu1 %258  ;;  %424 = vmatprep.subr.mxu1 %v963_v1 }
 0x1fc   :  { %425 = vmatpush1.msra.mxu1 %v271_v61  ;;  %v261_v4 = vmul.f32 %v1296_v63, %v259_v0  ;;  %v246_v13 = vmul.f32 %v1317_v9, %v244_v62  ;;  %v770_v61 = vld [vmem:[%s1566_s7 + $0x68] sm:$0xff] }
 0x1fd   :  { %426 = vmatprep.subr.mxu1 %v963_v1 }
 0x1fe   :  { %427 = vmatpush1.msra.mxu1 %v266_v2 }
 0x1ff   :  { %v357_v5 = vpop.permute.xlu0 %356  ;;  %v249_v7 = vpop.permute.xlu1 %248  ;;  %428 = vmatprep.subr.mxu1 %v963_v1 }
 0x200   :  { %429 = vmatpush1.msra.mxu1 %v261_v4  ;;  %v251_v10 = vmul.f32 %v1310_v6, %v249_v7  ;;  %v359_v19 = vmul.f32 %v1331_v14, %v357_v5 }
 0x201   :  { %430 = vmatprep.subr.mxu1 %v963_v1 }
 0x202   :  { %431 = vmatpush1.msra.mxu1 %v256_v8 }
 0x203   :  { %v362_v12 = vpop.permute.xlu1 %361  ;;  %432 = vmatprep.subr.mxu1 %v963_v1  ;;  %v347_v15 = vpop.permute.xlu0 %346 }
 0x204   :  { %433 = vmatpush1.msra.mxu1 %v251_v10  ;;  %v364_v16 = vmul.f32 %v1324_v11, %v362_v12  ;;  %v349_v25 = vmul.f32 %v1345_v20, %v347_v15 }
 0x205   :  { %434 = vmatprep.subr.mxu1 %v963_v1 }
 0x206   :  { %435 = vmatpush1.msra.mxu1 %v246_v13 }
 0x207   :  { %v352_v18 = vpop.permute.xlu1 %351  ;;  %450 = vmatprep.subr.mxu1 %v963_v1  ;;  %v337_v22 = vpop.permute.xlu0 %336 }
 0x208   :  { %451 = vmatpush2.msra.mxu1 %v364_v16  ;;  %v354_v21 = vmul.f32 %v1338_v17, %v352_v18  ;;  %v339_v33 = vmul.f32 %v1359_v26, %v337_v22 }
 0x209   :  { %452 = vmatprep.subr.mxu1 %v963_v1 }
 0x20a   :  { %453 = vmatpush2.msra.mxu1 %v359_v19 }
 0x20b   :  { %v342_v24 = vpop.permute.xlu1 %341  ;;  %454 = vmatprep.subr.mxu1 %v963_v1  ;;  %v327_v35 = vpop.permute.xlu0 %326 }
 0x20c   :  { %455 = vmatpush2.msra.mxu1 %v354_v21  ;;  %v344_v28 = vmul.f32 %v1352_v23, %v342_v24  ;;  %v329_v41 = vmul.f32 %v1373_v34, %v327_v35 }
 0x20d   :  { %456 = vmatprep.subr.mxu1 %v963_v1 }
 0x20e   :  { %457 = vmatpush2.msra.mxu1 %v349_v25 }
 0x20f   :  { %v332_v30 = vpop.permute.xlu1 %331  ;;  %458 = vmatprep.subr.mxu1 %v963_v1 }
 0x210   :  { %459 = vmatpush2.msra.mxu1 %v344_v28  ;;  %v334_v37 = vmul.f32 %v1366_v29, %v332_v30 }
 0x211   :  { %460 = vmatprep.subr.mxu1 %v963_v1 }
 0x212   :  { %461 = vmatpush2.msra.mxu1 %v339_v33 }
 0x213   :  { %v322_v40 = vpop.permute.xlu1 %321  ;;  %462 = vmatprep.subr.mxu1 %v963_v1 }
 0x214   :  { %463 = vmatpush2.msra.mxu1 %v334_v37  ;;  %v324_v43 = vmul.f32 %v1380_v38, %v322_v40 }
 0x215   :  { %464 = vmatprep.subr.mxu1 %v963_v1 }
 0x216   :  { %465 = vmatpush2.msra.mxu1 %v329_v41 }
 0x217   :  { %466 = vmatprep.subr.mxu1 %v963_v1 }
 0x218   :  { %467 = vmatpush2.msra.mxu1 %v324_v43  ;;  %v398_v46 = vpop.permute.xlu0 %397 }
 0x219   :  { %469 = vmatmul.mubr.f32.vlgmr.msra.gmra.mxu1 %v366_v44  ;;  %899 = vmatprep.subr.mxu1 %v963_v1 }
 0x21a   :  { %931 = vmatprep.mubr.msk.f32.mxu1 %vm986_vm0, %v963_v1  ;;  %900 = vmatpush3.msra.mxu1 %v772_v55  ;;  %v761_v55 = vld [vmem:[%s1566_s7 + $0x20] sm:$0xff] }
 0x21b   :  { %901 = vmatprep.subr.mxu1 %v963_v1 }
 0x21c   :  { %902 = vmatpush3.msra.mxu1 %v771_v56  ;;  %v760_v56 = vld [vmem:[%s1566_s7 + $0x18] sm:$0xff] }
 0x21d   :  { %903 = vmatprep.subr.mxu1 %v963_v1 }
 0x21e   :  { %904 = vmatpush3.msra.mxu1 %v770_v61  ;;  %v757_v61 = vld [vmem:[%s1566_s7] sm:$0xff] }
 0x21f   :  { %905 = vmatprep.subr.mxu1 %v963_v1 }
 0x2d9   :  { %v470_v47 = vpop.f32.mrf.mxu1 }
 0x2da   :  { %v471_v49 = vadd.f32 %v470_v47, %v398_v46  ;;  %v766_v47 = vld [vmem:[%s1566_s7 + $0x48] sm:$0xff] }
 0x2db   :  { %v472_v50 = vpop.f32.mrf.mxu1 }
 0x2dc   :  { %v474_v52 = vmax.f32 %v471_v49, 0.0  ;;  %v765_v49 = vld [vmem:[%s1566_s7 + $0x40] sm:$0xff]  ;;  %v764_v50 = vld [vmem:[%s1566_s7 + $0x38] sm:$0xff] }
 0x2de   :  { %543 = vrot.lane.b32.xlu0 %v474_v52, %s979_s23  ;;  %548 = vrot.lane.b32.xlu1 %v474_v52, %s978_s22  ;;  %s1608_s23 = smov 14   ;;  %v536_v10 = vmul.f32 %v474_v52, %v1234_v36 }
 0x2e2   :  { %530 = vrot.lane.b32.xlu0 %v474_v52, %s977_s21  ;;  %538 = vrot.lane.b32.xlu1 %v474_v52, %s976_s20  ;;  %s1609_s21 = smov 16  }
 0x2e6   :  { %520 = vrot.lane.b32.xlu0 %v474_v52, %s975_s19  ;;  %525 = vrot.lane.b32.xlu1 %v474_v52, %s974_s18  ;;  %s1610_s19 = smov 18  }
 0x2ea   :  { %510 = vrot.lane.b32.xlu0 %v474_v52, %s988_s15  ;;  %515 = vrot.lane.b32.xlu1 %v474_v52, %s972_s16 }
 0x2ee   :  { %500 = vrot.lane.b32.xlu0 %v474_v52, %s1605_s1  ;;  %505 = vrot.lane.b32.xlu1 %v474_v52, %s1606_s25 }
 0x2f2   :  { %490 = vrot.lane.b32.xlu0 %v474_v52, %s1607_s27  ;;  %495 = vrot.lane.b32.xlu1 %v474_v52, %s1608_s23 }
 0x2f6   :  { %480 = vrot.lane.b32.xlu0 %v474_v52, %s1596_s17  ;;  %485 = vrot.lane.b32.xlu1 %v474_v52, %s1609_s21 }
 0x2fa   :  { %593 = vrot.lane.b32.xlu0 %v474_v52, %s1598_s0  ;;  %475 = vrot.lane.b32.xlu1 %v474_v52, %s1610_s19 }
 0x2fe   :  { %583 = vrot.lane.b32.xlu0 %v474_v52, %s1600_s30  ;;  %588 = vrot.lane.b32.xlu1 %v474_v52, %s1595_s2 }
 0x302   :  { %573 = vrot.lane.b32.xlu0 %v474_v52, %s1602_s13  ;;  %578 = vrot.lane.b32.xlu1 %v474_v52, %s1597_s24 }
 0x306   :  { %563 = vrot.lane.b32.xlu0 %v474_v52, %s1603_s14  ;;  %568 = vrot.lane.b32.xlu1 %v474_v52, %s1599_s29 }
 0x30a   :  { %553 = vrot.lane.b32.xlu0 %v474_v52, %s1604_s26  ;;  %558 = vrot.lane.b32.xlu1 %v474_v52, %s1601_s12  ;;  %v763_v52 = vld [vmem:[%s1566_s7 + $0x30] sm:$0xff] }
 0x30e   :  { %776 = vperm.xlu0 %961, %v773_v58   ;;  %630 = vperm.xlu1 %962, %v860_v59   ;;  %v759_v58 = vld [vmem:[%s1566_s7 + $0x10] sm:$0xff]  ;;  %v758_v59 = vld [vmem:[%s1566_s7 + $0x8] sm:$0xff] }
 0x350   :  { %v544_v62 = vpop.permute.xlu0 %543  ;;  %v549_v0 = vpop.permute.xlu1 %548 }
 0x351   :  { %v551_v2 = vmul.f32 %v549_v0, %v1216_v27  ;;  %v546_v4 = vmul.f32 %v544_v62, %v1222_v31 }
 0x353   :  { %637 = vmatpush1.msra.mxu0 %v551_v2 }
 0x354   :  { %v531_v5 = vpop.permute.xlu0 %530  ;;  %638 = vmatprep.subr.mxu0 %v963_v1  ;;  %v539_v7 = vpop.permute.xlu1 %538 }
 0x355   :  { %v541_v8 = vmul.f32 %v539_v7, %v1227_v32  ;;  %639 = vmatpush1.msra.mxu0 %v546_v4  ;;  %v533_v27 = vmul.f32 %v531_v5, %v1241_v39  ;;  %v707_v4 = vld [vmem:[%s1567_s5] sm:$0xff]  ;;  %v862_v5 = vld [vmem:[%s1567_s5 + $0x8] sm:$0xff]  ;;  %v863_v7 = vld [vmem:[%s1567_s5 + $0x10] sm:$0xff] }
 0x356   :  { %640 = vmatprep.subr.mxu0 %v963_v1 }
 0x357   :  { %641 = vmatpush1.msra.mxu0 %v541_v8 }
 0x358   :  { %v521_v12 = vpop.permute.xlu0 %520  ;;  %642 = vmatprep.subr.mxu0 %v963_v1  ;;  %v526_v13 = vpop.permute.xlu1 %525 }
 0x359   :  { %643 = vmatpush1.msra.mxu0 %v536_v10  ;;  %v528_v31 = vmul.f32 %v526_v13, %v1247_v42  ;;  %v523_v16 = vmul.f32 %v521_v12, %v1254_v45  ;;  %v865_v12 = vld [vmem:[%s1567_s5 + $0x20] sm:$0xff] }
 0x35a   :  { %644 = vmatprep.subr.mxu0 %v963_v1 }
 0x35b   :  { %645 = vmatpush1.msra.mxu0 %v533_v27 }
 0x35c   :  { %v511_v15 = vpop.permute.xlu0 %510  ;;  %v516_v32 = vpop.permute.xlu1 %515  ;;  %646 = vmatprep.subr.mxu0 %v963_v1 }
 0x35d   :  { %647 = vmatpush1.msra.mxu0 %v528_v31  ;;  %v518_v36 = vmul.f32 %v516_v32, %v1261_v48  ;;  %v513_v19 = vmul.f32 %v511_v15, %v1268_v51 }
 0x35e   :  { %648 = vmatprep.subr.mxu0 %v963_v1 }
 0x35f   :  { %649 = vmatpush1.msra.mxu0 %v523_v16 }
 0x360   :  { %v501_v18 = vpop.permute.xlu0 %500  ;;  %v506_v39 = vpop.permute.xlu1 %505  ;;  %650 = vmatprep.subr.mxu0 %v963_v1 }
 0x361   :  { %651 = vmatpush1.msra.mxu0 %v518_v36  ;;  %v508_v42 = vmul.f32 %v506_v39, %v1275_v54  ;;  %v503_v22 = vmul.f32 %v501_v18, %v1282_v57 }
 0x362   :  { %652 = vmatprep.subr.mxu0 %v963_v1 }
 0x363   :  { %653 = vmatpush1.msra.mxu0 %v513_v19 }
 0x364   :  { %v491_v21 = vpop.permute.xlu0 %490  ;;  %v496_v45 = vpop.permute.xlu1 %495  ;;  %654 = vmatprep.subr.mxu0 %v963_v1 }
 0x365   :  { %655 = vmatpush1.msra.mxu0 %v508_v42  ;;  %v498_v48 = vmul.f32 %v496_v45, %v1289_v60  ;;  %v493_v25 = vmul.f32 %v491_v21, %v1296_v63 }
 0x366   :  { %656 = vmatprep.subr.mxu0 %v963_v1 }
 0x367   :  { %657 = vmatpush1.msra.mxu0 %v503_v22 }
 0x368   :  { %v481_v24 = vpop.permute.xlu0 %480  ;;  %v486_v51 = vpop.permute.xlu1 %485  ;;  %658 = vmatprep.subr.mxu0 %v963_v1 }
 0x369   :  { %659 = vmatpush1.msra.mxu0 %v498_v48  ;;  %v488_v54 = vmul.f32 %v486_v51, %v1303_v3  ;;  %v483_v30 = vmul.f32 %v481_v24, %v1310_v6 }
 0x36a   :  { %660 = vmatprep.subr.mxu0 %v963_v1 }
 0x36b   :  { %661 = vmatpush1.msra.mxu0 %v493_v25 }
 0x36c   :  { %v594_v28 = vpop.permute.xlu0 %593  ;;  %v476_v57 = vpop.permute.xlu1 %475  ;;  %662 = vmatprep.subr.mxu0 %v963_v1 }
 0x36d   :  { %663 = vmatpush1.msra.mxu0 %v488_v54  ;;  %v478_v60 = vmul.f32 %v476_v57, %v1317_v9  ;;  %v596_v35 = vmul.f32 %v594_v28, %v1324_v11 }
 0x36e   :  { %664 = vmatprep.subr.mxu0 %v963_v1 }
 0x36f   :  { %665 = vmatpush1.msra.mxu0 %v483_v30 }
 0x370   :  { %v584_v33 = vpop.permute.xlu0 %583  ;;  %v589_v63 = vpop.permute.xlu1 %588  ;;  %666 = vmatprep.subr.mxu0 %v963_v1 }
 0x371   :  { %667 = vmatpush1.msra.mxu0 %v478_v60  ;;  %v591_v3 = vmul.f32 %v589_v63, %v1331_v14  ;;  %v586_v40 = vmul.f32 %v584_v33, %v1338_v17 }
 0x372   :  { %682 = vmatprep.subr.mxu0 %v963_v1 }
 0x373   :  { %683 = vmatpush2.msra.mxu0 %v596_v35 }
 0x374   :  { %v574_v37 = vpop.permute.xlu0 %573  ;;  %v579_v6 = vpop.permute.xlu1 %578  ;;  %684 = vmatprep.subr.mxu0 %v963_v1 }
 0x375   :  { %685 = vmatpush2.msra.mxu0 %v591_v3  ;;  %v581_v9 = vmul.f32 %v579_v6, %v1345_v20  ;;  %v576_v43 = vmul.f32 %v574_v37, %v1352_v23 }
 0x376   :  { %686 = vmatprep.subr.mxu0 %v963_v1 }
 0x377   :  { %687 = vmatpush2.msra.mxu0 %v586_v40 }
 0x378   :  { %v564_v41 = vpop.permute.xlu0 %563  ;;  %v569_v11 = vpop.permute.xlu1 %568  ;;  %688 = vmatprep.subr.mxu0 %v963_v1 }
 0x379   :  { %689 = vmatpush2.msra.mxu0 %v581_v9  ;;  %v571_v14 = vmul.f32 %v569_v11, %v1359_v26  ;;  %v566_v17 = vmul.f32 %v564_v41, %v1366_v29  ;;  %v858_v26 = vld [vmem:[%s1564_s3 + $0x10] sm:$0xff]  ;;  %v769_v29 = vld [vmem:[%s1566_s7 + $0x60] sm:$0xff] }
 0x37a   :  { %690 = vmatprep.subr.mxu0 %v963_v1  ;;  %906 = vmatpush3.msra.mxu1 %v769_v29 }
 0x37b   :  { %691 = vmatpush2.msra.mxu0 %v576_v43  ;;  %907 = vmatprep.subr.mxu1 %v963_v1 }
 0x37c   :  { %v559_v44 = vpop.permute.xlu1 %558  ;;  %692 = vmatprep.subr.mxu0 %v963_v1  ;;  %v554_v20 = vpop.permute.xlu0 %553 }
 0x37d   :  { %693 = vmatpush2.msra.mxu0 %v571_v14  ;;  %v561_v46 = vmul.f32 %v559_v44, %v1373_v34  ;;  %v556_v23 = vmul.f32 %v554_v20, %v1380_v38  ;;  %v768_v34 = vld [vmem:[%s1566_s7 + $0x58] sm:$0xff]  ;;  %v767_v38 = vld [vmem:[%s1566_s7 + $0x50] sm:$0xff] }
 0x37e   :  { %694 = vmatprep.subr.mxu0 %v963_v1  ;;  %908 = vmatpush3.msra.mxu1 %v768_v34 }
 0x37f   :  { %695 = vmatpush2.msra.mxu0 %v566_v17  ;;  %909 = vmatprep.subr.mxu1 %v963_v1 }
 0x380   :  { %696 = vmatprep.subr.mxu0 %v963_v1  ;;  %910 = vmatpush3.msra.mxu1 %v767_v38 }
 0x381   :  { %697 = vmatpush2.msra.mxu0 %v561_v46  ;;  %911 = vmatprep.subr.mxu1 %v963_v1 }
 0x382   :  { %698 = vmatprep.subr.mxu0 %v963_v1  ;;  %912 = vmatpush3.msra.mxu1 %v766_v47 }
 0x383   :  { %699 = vmatpush2.msra.mxu0 %v556_v23  ;;  %913 = vmatprep.subr.mxu1 %v963_v1 }
 0x384   :  { %701 = vmatmul.mubr.f32.vlgmr.msra.gmra.mxu0 %v858_v26  ;;  %914 = vmatpush3.msra.mxu1 %v765_v49 }
 0x385   :  { %915 = vmatprep.subr.mxu1 %v963_v1 }
 0x386   :  { %916 = vmatpush3.msra.mxu1 %v764_v50 }
 0x387   :  { %917 = vmatprep.subr.mxu1 %v963_v1 }
 0x388   :  { %918 = vmatpush3.msra.mxu1 %v763_v52 }
 0x389   :  { %919 = vmatprep.subr.mxu1 %v963_v1  ;;  %v631_v62 = vpop.permute.xlu1 %630  ;;  %v777_v17 = vpop.permute.xlu0 %776 }
 0x38a   :  { %920 = vmatpush3.msra.mxu1 %v762_v53 }
 0x38b   :  { %921 = vmatprep.subr.mxu1 %v963_v1 }
 0x38c   :  { %922 = vmatpush3.msra.mxu1 %v761_v55 }
 0x38d   :  { %923 = vmatprep.subr.mxu1 %v963_v1 }
 0x38e   :  { %924 = vmatpush3.msra.mxu1 %v760_v56 }
 0x38f   :  { %925 = vmatprep.subr.mxu1 %v963_v1 }
 0x390   :  { %926 = vmatpush3.msra.mxu1 %v759_v58 }
 0x391   :  { %927 = vmatprep.subr.mxu1 %v963_v1 }
 0x392   :  { %928 = vmatpush3.msra.mxu1 %v758_v59 }
 0x393   :  { %929 = vmatprep.subr.mxu1 %v963_v1  ;;  %v864_v1 = vld [vmem:[%s1567_s5 + $0x18] sm:$0xff] }
 0x394   :  { %930 = vmatpush3.msra.mxu1 %v757_v61 }
 0x444   :  { %v702_v0 = vpop.f32.mrf.mxu0 }
 0x445   :  { %v703_v2 = vadd.f32 %v702_v0, %v631_v62 }
 0x446   :  { %v704_v8 = vpop.f32.mrf.mxu0 }
 0x447   :  { %v706_v10 = vmax.f32 %v703_v2, 0.0 }
 0x449   :  { %v708_v13 = vmul.f32 %v707_v4, %v706_v10  ;;  %v718_v27 = vmul.f32 %v862_v5, %v706_v10  ;;  %v728_v31 = vmul.f32 %v863_v7, %v706_v10  ;;  %v738_v15 = vmul.f32 %v864_v1, %v706_v10 }
 0x44a   :  { %v748_v32 = vmul.f32 %v865_v12, %v706_v10 }
 0x44b   :  { %v709_v16 = vrot.slane %v708_v13, 4  ;;  %v719_v36 = vrot.slane %v718_v27, 4  ;;  %v729_v18 = vrot.slane %v728_v31, 4  ;;  %v739_v39 = vrot.slane %v738_v15, 4 }
 0x44c   :  { %v749_v19 = vrot.slane %v748_v32, 4 }
 0x44d   :  { %v710_v42 = vadd.f32 %v709_v16, %v708_v13  ;;  %v720_v21 = vadd.f32 %v719_v36, %v718_v27  ;;  %v730_v45 = vadd.f32 %v729_v18, %v728_v31  ;;  %v740_v22 = vadd.f32 %v739_v39, %v738_v15 }
 0x44e   :  { %v750_v48 = vadd.f32 %v749_v19, %v748_v32 }
 0x44f   :  { %v711_v24 = vrot.slane %v710_v42, 2  ;;  %v721_v51 = vrot.slane %v720_v21, 2  ;;  %v731_v25 = vrot.slane %v730_v45, 2  ;;  %v741_v54 = vrot.slane %v740_v22, 2 }
 0x450   :  { %v751_v28 = vrot.slane %v750_v48, 2 }
 0x451   :  { %v712_v57 = vadd.f32 %v711_v24, %v710_v42  ;;  %v722_v30 = vadd.f32 %v721_v51, %v720_v21  ;;  %v732_v60 = vadd.f32 %v731_v25, %v730_v45  ;;  %v742_v33 = vadd.f32 %v741_v54, %v740_v22 }
 0x452   :  { %v752_v63 = vadd.f32 %v751_v28, %v750_v48 }
 0x453   :  { %v713_v35 = vrot.slane %v712_v57, 1  ;;  %v723_v3 = vrot.slane %v722_v30, 1  ;;  %v733_v37 = vrot.slane %v732_v60, 1  ;;  %v743_v6 = vrot.slane %v742_v33, 1 }
 0x454   :  { %v753_v40 = vrot.slane %v752_v63, 1 }
 0x455   :  { %v714_v9 = vadd.f32 %v713_v35, %v712_v57  ;;  %v724_v41 = vadd.f32 %v723_v3, %v722_v30  ;;  %v734_v11 = vadd.f32 %v733_v37, %v732_v60  ;;  %v744_v43 = vadd.f32 %v743_v6, %v742_v33 }
 0x456   :  { %v754_v14 = vadd.f32 %v753_v40, %v752_v63 }
 0x457   :  { %715 = vst [vmem:[#allocation4] sm:$0x1] %v714_v9  ;;  %725 = vst [vmem:[#allocation4 + $0x1] sm:$0x1] %v724_v41 }
 0x458   :  { %735 = vst [vmem:[#allocation4 + $0x2] sm:$0x1] %v734_v11  ;;  %745 = vst [vmem:[#allocation4 + $0x3] sm:$0x1] %v744_v43 }
 0x459   :  { %755 = vst [vmem:[#allocation4 + $0x4] sm:$0x1] %v754_v14 }
 0x460   :  { %v756_v44 = vld [vmem:[#allocation4] sm:$0x1f] }
 0x461   :  { %932 = vmatmul.mubr.f32.vlgmr.msra.gmra.mxu1 %v756_v44 }
 0x521   :  { %v845_v20 = vpop.f32.mrf.mxu1 }
 0x522   :  { %v846_v46 = vadd.f32 %v845_v20, %v777_v17 }
 0x523   :  { %v933_v23 = vpop.f32.mrf.mxu1 }
 0x524   :  { %850 = vst.msk [vmem:[%s1568_s8] sm:$0x1f] %vm849_vm3, %v846_v46 }

</bundles_post_ra>
